<compile_context>
chip_gen: v7x
topology: tpu7x:2x2x1
jax: 0.10.0
libtpu: 0.0.40
codegen_flags: <defaults>
</compile_context>

<pallas_src>
from functools import partial

import jax
import jax.numpy as jnp
from jax.experimental import pallas as pl
from jax.experimental.pallas import tpu as pltpu


def _bow_kernel(x_ref, att_ref, wfc_ref, bfc_ref, wproj_ref, bproj_ref,
                whead_ref, bhead_ref, out_ref, x2_ref):
    # x_ref: (Bt, T, C) f32;  att_ref: (Bt, T, T) bf16 causal-mean operator;
    # wfc/wproj/whead: bf16; biases f32; out_ref: (Bt*T, TV); x2_ref: (Bt*T, C) bf16.
    Bt, T, C = x_ref.shape
    M = Bt * T

    # Feature prologue runs only on the first vocab tile of each batch tile;
    # its result is cached in VMEM scratch and reused by every vocab tile.
    @pl.when(pl.program_id(1) == 0)
    def _features():
        x = x_ref[...]                                             # (Bt,T,C) f32
        # --- CausalBoW: batched (T,T) tril/(t+1) operator, bf16 ops, f32 acc ---
        y = jnp.einsum('bts,bsc->btc', att_ref[...], x.astype(jnp.bfloat16),
                       preferred_element_type=jnp.float32)
        # Merge (Bt, T) -> rows.  With T a multiple of 8 (sublane tile) this is
        # a pure relabel of the leading dims — no VMEM relayout.
        x1 = (x + y).reshape(M, C)                                 # residual
        # --- MLP: x + c_proj(tanh(c_fc(x))); bf16 operands, f32 accumulation ---
        h = jnp.tanh(
            jnp.dot(x1.astype(jnp.bfloat16), wfc_ref[...],
                    preferred_element_type=jnp.float32) + bfc_ref[...])   # (M,H)
        x2 = x1 + (jnp.dot(h.astype(jnp.bfloat16), wproj_ref[...],
                           preferred_element_type=jnp.float32) + bproj_ref[...])
        x2_ref[...] = x2.astype(x2_ref.dtype)                      # cache (bf16)

    # --- lm_head: only this grid step's lane-dense vocab tile ---
    logits = (jnp.dot(x2_ref[...], whead_ref[...],
                      preferred_element_type=jnp.float32) + bhead_ref[...])
    out_ref[...] = logits.astype(out_ref.dtype)


@partial(jax.jit, static_argnames=("batch_tile", "vocab_tile", "out_dtype"))
def bow_forward(idx, params, *, batch_tile=None, vocab_tile=512,
                out_dtype=jnp.float32):
    """idx: (B, T) int32 token ids. Returns logits (B, T, vocab).

    out_dtype=jnp.bfloat16 halves the logits HBM writeback (most useful on
    v5e's lower HBM bandwidth) if the downstream loss tolerates it.
    """
    wte, wpe, wfc, bfc, wproj, bproj, whead, bhead = params
    B, T = idx.shape
    C = wte.shape[1]
    H = wfc.shape[1]
    V = whead.shape[1]

    # Bt*T = 256 fills the 2x256 MXU on v6e/v7x; use batch_tile=128//T on v5e.
    if batch_tile is None:
        batch_tile = max(1, 256 // T)
    Bt = min(batch_tile, B)
    Bp = pl.cdiv(B, Bt) * Bt                # padded batch (multiple of Bt)
    M = Bt * T

    TV = min(vocab_tile, pl.cdiv(V, 128) * 128)   # lane-dense vocab tile
    Vp = pl.cdiv(V, TV) * TV                      # padded vocab

    if Bp != B:
        idx = jnp.pad(idx, ((0, Bp - B), (0, 0)))

    # Glue: embedding + positional lookup (gathers) stay in plain JAX.
    x = (wte[idx] + wpe[:T][None, :, :]).astype(jnp.float32)   # (Bp, T, C)

    # Per-batch causal-mean operator: row t averages positions s <= t,
    # i.e. tril(ones)/(t+1).  bf16, broadcast over the batch tile.
    att_tt = (jnp.tril(jnp.ones((T, T), jnp.float32))
              / jnp.arange(1, T + 1, dtype=jnp.float32)[:, None])   # (T, T)
    att_b = jnp.broadcast_to(att_tt, (Bt, T, T)).astype(jnp.bfloat16)

    # bf16 weights (f32 accumulation happens inside the kernel); pad vocab.
    wfc_bf = wfc.astype(jnp.bfloat16)
    wproj_bf = wproj.astype(jnp.bfloat16)
    whead_p = jnp.pad(whead, ((0, 0), (0, Vp - V))).astype(jnp.bfloat16)
    bhead_p = jnp.pad(bhead, ((0, 0), (0, Vp - V)))

    # Resident (constant-index) blocks never change -> single-buffer them.
    resident = dict(pipeline_mode=pl.Buffered(1))

    out = pl.pallas_call(
        _bow_kernel,
        out_shape=jax.ShapeDtypeStruct((Bp * T, Vp), out_dtype),
        grid_spec=pltpu.PrefetchScalarGridSpec(
            num_scalar_prefetch=0,
            grid=(Bp // Bt, Vp // TV),          # vocab innermost ("arbitrary")
            in_specs=[
                pl.BlockSpec((Bt, T, C), lambda b, v: (b, 0, 0)),            # x
                pl.BlockSpec((Bt, T, T), lambda b, v: (0, 0, 0), **resident),  # BoW op
                pl.BlockSpec((C, H), lambda b, v: (0, 0), **resident),       # c_fc W
                pl.BlockSpec((1, H), lambda b, v: (0, 0), **resident),       # c_fc b
                pl.BlockSpec((H, C), lambda b, v: (0, 0), **resident),       # c_proj W
                pl.BlockSpec((1, C), lambda b, v: (0, 0), **resident),       # c_proj b
                pl.BlockSpec((C, TV), lambda b, v: (0, v)),                  # lm_head W
                pl.BlockSpec((1, TV), lambda b, v: (0, v)),                  # lm_head b
            ],
            out_specs=pl.BlockSpec((M, TV), lambda b, v: (b, v)),
            scratch_shapes=[pltpu.VMEM((M, C), jnp.bfloat16)],    # cached x2
        ),
        compiler_params=pltpu.CompilerParams(
            dimension_semantics=("parallel", "arbitrary"),
            vmem_limit_bytes=64 * 1024 * 1024),
    )(x, att_b, wfc_bf, bfc, wproj_bf, bproj, whead_p, bhead_p)

    return out.reshape(Bp, T, Vp)[:B, :, :V]


def bow_forward_ref(idx, params):
    """Pure-JAX f32 reference for correctness checking."""
    wte, wpe, wfc, bfc, wproj, bproj, whead, bhead = params
    B, T = idx.shape
    x = wte[idx] + wpe[:T][None, :, :]
    rows = jnp.arange(T)[:, None]
    cols = jnp.arange(T)[None, :]
    att = jnp.where(cols <= rows, 1.0, 0.0) / (rows + 1.0).astype(jnp.float32)
    x = x + jnp.einsum('ts,bsc->btc', att, x)
    x = x + (jnp.tanh(x @ wfc + bfc) @ wproj + bproj)
    return x @ whead + bhead


def init_params(key, vocab_size, n_embd, n_embd2, block_size):
    ks = jax.random.split(key, 8)
    std = 0.02
    wte = jax.random.normal(ks[0], (vocab_size, n_embd), jnp.float32) * std
    wpe = jax.random.normal(ks[1], (block_size, n_embd), jnp.float32)        # randn PE
    wfc = jax.random.normal(ks[2], (n_embd, n_embd2), jnp.float32) * std
    bfc = jax.random.normal(ks[3], (1, n_embd2), jnp.float32) * std
    wproj = jax.random.normal(ks[4], (n_embd2, n_embd), jnp.float32) * std
    bproj = jax.random.normal(ks[5], (1, n_embd), jnp.float32) * std
    whead = jax.random.normal(ks[6], (n_embd, vocab_size), jnp.float32) * std
    bhead = jax.random.normal(ks[7], (1, vocab_size), jnp.float32) * std
    return (wte, wpe, wfc, bfc, wproj, bproj, whead, bhead)


if __name__ == "__main__":
    # Small deterministic config.  B=64, T=8 with the default batch_tile gives
    # Bt*T = 256 (full MXU height on v6e/v7x) and 2 batch-parallel grid steps
    # (exercises megacore sharding); vocab fits one 128-wide lane-dense tile.
    B, block_size = 64, 8
    n_embd, n_embd2, vocab_size = 32, 64, 16

    key = jax.random.PRNGKey(0)
    pkey, ikey = jax.random.split(key)
    params = init_params(pkey, vocab_size, n_embd, n_embd2, block_size)
    idx = jax.random.randint(ikey, (B, block_size), 0, vocab_size, jnp.int32)

    logits = jax.block_until_ready(bow_forward(idx, params))
    ref = bow_forward_ref(idx, params)

    assert logits.shape == (B, block_size, vocab_size)
    # bf16 operands (f32 accumulation) shift results at the ~1e-3 level.
    assert jnp.allclose(logits, ref, atol=2e-2, rtol=2e-2), \
        float(jnp.max(jnp.abs(logits - ref)))

    print("KERNEL_OK")
</pallas_src>

<mosaic_0001>
module attributes {stable_mosaic.version = 11 : i64} {
  func.func @_bow_kernel(%arg0: i32, %arg1: i32, %arg2: memref<32x8x32xf32, #tpu.memory_space<vmem>>, %arg3: memref<32x8x8xbf16, #tpu.memory_space<vmem>>, %arg4: memref<32x64xbf16, #tpu.memory_space<vmem>>, %arg5: memref<1x64xf32, #tpu.memory_space<vmem>>, %arg6: memref<64x32xbf16, #tpu.memory_space<vmem>>, %arg7: memref<1x32xf32, #tpu.memory_space<vmem>>, %arg8: memref<32x128xbf16, #tpu.memory_space<vmem>>, %arg9: memref<1x128xf32, #tpu.memory_space<vmem>>, %arg10: memref<256x128xf32, #tpu.memory_space<vmem>>, %arg11: memref<256x32xbf16, #tpu.memory_space<vmem>>) attributes {dimension_semantics = [#tpu.dimension_semantics<parallel>, #tpu.dimension_semantics<arbitrary>], iteration_bounds = array<i64: 2, 1>, scalar_prefetch = 0 : i64, scratch_operands = 1 : i64, tpu.core_type = #tpu.core_type<tc>, window_params = [{transform_indices = @transform_0, window_bounds = array<i64: 32, 8, 32>}, {pipeline_mode = #tpu.pipeline_mode<synchronous>, transform_indices = @transform_1, window_bounds = array<i64: 32, 8, 8>}, {pipeline_mode = #tpu.pipeline_mode<synchronous>, transform_indices = @transform_2, window_bounds = array<i64: 32, 64>}, {pipeline_mode = #tpu.pipeline_mode<synchronous>, transform_indices = @transform_3, window_bounds = array<i64: 1, 64>}, {pipeline_mode = #tpu.pipeline_mode<synchronous>, transform_indices = @transform_4, window_bounds = array<i64: 64, 32>}, {pipeline_mode = #tpu.pipeline_mode<synchronous>, transform_indices = @transform_5, window_bounds = array<i64: 1, 32>}, {transform_indices = @transform_6, window_bounds = array<i64: 32, 128>}, {transform_indices = @transform_7, window_bounds = array<i64: 1, 128>}, {transform_indices = @transform_8, window_bounds = array<i64: 256, 128>}]} {
    %c0_i32 = arith.constant 0 : i32
    %0 = arith.cmpi eq, %arg1, %c0_i32 : i32
    %1 = arith.extui %0 : i1 to i32
    %c0_i32_0 = arith.constant 0 : i32
    %2 = arith.cmpi ne, %1, %c0_i32_0 : i32
    scf.if %2 {
      %c0_8 = arith.constant 0 : index
      %c0_9 = arith.constant 0 : index
      %c0_10 = arith.constant 0 : index
      %10 = vector.load %arg2[%c0_8, %c0_9, %c0_10] : memref<32x8x32xf32, #tpu.memory_space<vmem>>, vector<32x8x32xf32>
      %c0_11 = arith.constant 0 : index
      %c0_12 = arith.constant 0 : index
      %c0_13 = arith.constant 0 : index
      %11 = vector.load %arg3[%c0_11, %c0_12, %c0_13] : memref<32x8x8xbf16, #tpu.memory_space<vmem>>, vector<32x8x8xbf16>
      %12 = arith.truncf %10 : vector<32x8x32xf32> to vector<32x8x32xbf16>
      "tpu.trace_start"() <{level = 10 : i32, message = "bts,bsc->btc"}> : () -> ()
      %cst_14 = arith.constant dense<0.000000e+00> : vector<32x8x32xf32>
      %13 = tpu.matmul %11, %12, %cst_14 {dimension_numbers = #tpu.dot_dimension_numbers<[2], [1], [1], [2], [0, 0, 0, 1, 1, 2], [0], [0]>} : vector<32x8x8xbf16>, vector<32x8x32xbf16>, vector<32x8x32xf32> -> vector<32x8x32xf32>
      "tpu.trace_stop"() : () -> ()
      %14 = arith.addf %10, %13 : vector<32x8x32xf32>
      %15 = vector.shape_cast %14 : vector<32x8x32xf32> to vector<256x32xf32>
      %16 = arith.truncf %15 : vector<256x32xf32> to vector<256x32xbf16>
      %c0_15 = arith.constant 0 : index
      %c0_16 = arith.constant 0 : index
      %17 = vector.load %arg4[%c0_15, %c0_16] : memref<32x64xbf16, #tpu.memory_space<vmem>>, vector<32x64xbf16>
      %cst_17 = arith.constant dense<0.000000e+00> : vector<256x64xf32>
      %18 = tpu.matmul %16, %17, %cst_17 {dimension_numbers = #tpu.dot_dimension_numbers<[1], [0], [0], [1], [0, 0, 1, 1], [], []>} : vector<256x32xbf16>, vector<32x64xbf16>, vector<256x64xf32> -> vector<256x64xf32>
      %c0_18 = arith.constant 0 : index
      %c0_19 = arith.constant 0 : index
      %19 = vector.load %arg5[%c0_18, %c0_19] : memref<1x64xf32, #tpu.memory_space<vmem>>, vector<1x64xf32>
      %20 = vector.broadcast %19 : vector<1x64xf32> to vector<256x64xf32>
      %21 = arith.addf %18, %20 : vector<256x64xf32>
      %22 = math.tanh %21 : vector<256x64xf32>
      %23 = arith.truncf %22 : vector<256x64xf32> to vector<256x64xbf16>
      %c0_20 = arith.constant 0 : index
      %c0_21 = arith.constant 0 : index
      %24 = vector.load %arg6[%c0_20, %c0_21] : memref<64x32xbf16, #tpu.memory_space<vmem>>, vector<64x32xbf16>
      %cst_22 = arith.constant dense<0.000000e+00> : vector<256x32xf32>
      %25 = tpu.matmul %23, %24, %cst_22 {dimension_numbers = #tpu.dot_dimension_numbers<[1], [0], [0], [1], [0, 0, 1, 1], [], []>} : vector<256x64xbf16>, vector<64x32xbf16>, vector<256x32xf32> -> vector<256x32xf32>
      %c0_23 = arith.constant 0 : index
      %c0_24 = arith.constant 0 : index
      %26 = vector.load %arg7[%c0_23, %c0_24] : memref<1x32xf32, #tpu.memory_space<vmem>>, vector<1x32xf32>
      %27 = vector.broadcast %26 : vector<1x32xf32> to vector<256x32xf32>
      %28 = arith.addf %25, %27 : vector<256x32xf32>
      %29 = arith.addf %15, %28 : vector<256x32xf32>
      %30 = arith.truncf %29 : vector<256x32xf32> to vector<256x32xbf16>
      %c0_25 = arith.constant 0 : index
      %c0_26 = arith.constant 0 : index
      %31 = vector.load %arg11[%c0_25, %c0_26] : memref<256x32xbf16, #tpu.memory_space<vmem>>, vector<256x32xbf16>
      tpu.vector_store %arg11[%c0_25, %c0_26], %30 {strides = array<i32>} : memref<256x32xbf16, #tpu.memory_space<vmem>>, vector<256x32xbf16>,
    } else {
    }
    %c0 = arith.constant 0 : index
    %c0_1 = arith.constant 0 : index
    %3 = vector.load %arg11[%c0, %c0_1] : memref<256x32xbf16, #tpu.memory_space<vmem>>, vector<256x32xbf16>
    %c0_2 = arith.constant 0 : index
    %c0_3 = arith.constant 0 : index
    %4 = vector.load %arg8[%c0_2, %c0_3] : memref<32x128xbf16, #tpu.memory_space<vmem>>, vector<32x128xbf16>
    %cst = arith.constant dense<0.000000e+00> : vector<256x128xf32>
    %5 = tpu.matmul %3, %4, %cst {dimension_numbers = #tpu.dot_dimension_numbers<[1], [0], [0], [1], [0, 0, 1, 1], [], []>} : vector<256x32xbf16>, vector<32x128xbf16>, vector<256x128xf32> -> vector<256x128xf32>
    %c0_4 = arith.constant 0 : index
    %c0_5 = arith.constant 0 : index
    %6 = vector.load %arg9[%c0_4, %c0_5] : memref<1x128xf32, #tpu.memory_space<vmem>>, vector<1x128xf32>
    %7 = vector.broadcast %6 : vector<1x128xf32> to vector<256x128xf32>
    %8 = arith.addf %5, %7 : vector<256x128xf32>
    %c0_6 = arith.constant 0 : index
    %c0_7 = arith.constant 0 : index
    %9 = vector.load %arg10[%c0_6, %c0_7] : memref<256x128xf32, #tpu.memory_space<vmem>>, vector<256x128xf32>
    tpu.vector_store %arg10[%c0_6, %c0_7], %8 {strides = array<i32>} : memref<256x128xf32, #tpu.memory_space<vmem>>, vector<256x128xf32>,
    return
  }
  func.func @transform_0(%arg0: i32, %arg1: i32) -> (i32, i32, i32) {
    %c0_i32 = arith.constant 0 : i32
    %c0_i32_0 = arith.constant 0 : i32
    %c0_i32_1 = arith.constant 0 : i32
    return %arg0, %c0_i32, %c0_i32_0 : i32, i32, i32
  }
  func.func @transform_1(%arg0: i32, %arg1: i32) -> (i32, i32, i32) {
    %c0_i32 = arith.constant 0 : i32
    %c0_i32_0 = arith.constant 0 : i32
    %c0_i32_1 = arith.constant 0 : i32
    %c0_i32_2 = arith.constant 0 : i32
    return %c0_i32, %c0_i32_0, %c0_i32_1 : i32, i32, i32
  }
  func.func @transform_2(%arg0: i32, %arg1: i32) -> (i32, i32) {
    %c0_i32 = arith.constant 0 : i32
    %c0_i32_0 = arith.constant 0 : i32
    %c0_i32_1 = arith.constant 0 : i32
    return %c0_i32, %c0_i32_0 : i32, i32
  }
  func.func @transform_3(%arg0: i32, %arg1: i32) -> (i32, i32) {
    %c0_i32 = arith.constant 0 : i32
    %c0_i32_0 = arith.constant 0 : i32
    %c0_i32_1 = arith.constant 0 : i32
    return %c0_i32, %c0_i32_0 : i32, i32
  }
  func.func @transform_4(%arg0: i32, %arg1: i32) -> (i32, i32) {
    %c0_i32 = arith.constant 0 : i32
    %c0_i32_0 = arith.constant 0 : i32
    %c0_i32_1 = arith.constant 0 : i32
    return %c0_i32, %c0_i32_0 : i32, i32
  }
  func.func @transform_5(%arg0: i32, %arg1: i32) -> (i32, i32) {
    %c0_i32 = arith.constant 0 : i32
    %c0_i32_0 = arith.constant 0 : i32
    %c0_i32_1 = arith.constant 0 : i32
    return %c0_i32, %c0_i32_0 : i32, i32
  }
  func.func @transform_6(%arg0: i32, %arg1: i32) -> (i32, i32) {
    %c0_i32 = arith.constant 0 : i32
    %c0_i32_0 = arith.constant 0 : i32
    return %c0_i32, %arg1 : i32, i32
  }
  func.func @transform_7(%arg0: i32, %arg1: i32) -> (i32, i32) {
    %c0_i32 = arith.constant 0 : i32
    %c0_i32_0 = arith.constant 0 : i32
    return %c0_i32, %arg1 : i32, i32
  }
  func.func @transform_8(%arg0: i32, %arg1: i32) -> (i32, i32) {
    %c0_i32 = arith.constant 0 : i32
    return %arg0, %arg1 : i32, i32
  }
}

</mosaic_0001>

<bundles_post_ra>
// kernel: bow_forward.1
= control target key start
LH: loop header
LB: loop body
LE: loop exit
PB: predicated region body
PF: predicated region fallthrough
CT: control target
= control target key end

     0   :  { %s5330_s0 = inlined_call_operand.hbm [shape: f32[64,8,32], index: 0, kind: input, shape index: {}]   ;;  %s5331_s1 = inlined_call_operand.hbm [shape: bf16[32,8,8], index: 1, kind: input, shape index: {}]   ;;  %s5332_s2 = inlined_call_operand.hbm [shape: bf16[32,64], index: 2, kind: input, shape index: {}]   ;;  %s5333_s3 = inlined_call_operand.hbm [shape: f32[1,64], index: 3, kind: input, shape index: {}]   ;;  %s5334_s4 = inlined_call_operand.hbm [shape: bf16[64,32], index: 4, kind: input, shape index: {}]   ;;  %s5335_s5 = inlined_call_operand.hbm [shape: f32[1,32], index: 5, kind: input, shape index: {}]   ;;  %s5336_s6 = inlined_call_operand.hbm [shape: bf16[32,128], index: 6, kind: input, shape index: {}]   ;;  %s5337_s7 = inlined_call_operand.hbm [shape: f32[1,128], index: 7, kind: input, shape index: {}]   ;;  %s5338_s8 = inlined_call_operand.hbm [shape: f32[512,128], index: 8, kind: output, shape index: {}]  }
   0x1   :  { %5347 = sst [smem:[#allocation25_spill]] %s5331_s1 }
   0x2   :  { %5348 = sst [smem:[#allocation26_spill]] %s5338_s8 }
   0x3   :  { %13 = vsyncpa [#allocation4], 0 }
   0x4   :  { %15 = vsyncpa [#allocation4 + $0x1], 0 }
   0x5   :  { %16 = vsyncpa [#allocation7], 0 }
   0x6   :  { %17 = vsyncpa [#allocation10], 0 }
   0x7   :  { %18 = vsyncpa [#allocation13], 0 }
   0x8   :  { %19 = vsyncpa [#allocation16], 0 }
   0x9   :  { %20 = vsyncpa [#allocation5], 0 }
   0xa   :  { %22 = vsyncpa [#allocation5 + $0x1], 0  ;;  %s4268_s27 = smov 0   ;;  %s4270_s28 = smov 0  }
   0xb   :  { %s4272_s29 = smov 0   ;;  %s4274_s30 = smov 0  }
   0xc   :  { %s4276_s9 = smov 0   ;;  %s4278_s10 = smov 0  }
   0xd LB: > { %5349 = sst [smem:[#allocation24_spill]] %s4196_s30  ;;  %s5339_s11 = sadd.s32 4294967295, %s4204_s10   ;;  %s4204_s10 = sphi %s4278_s10, %s28_s10   ;;  %s4200_s9 = sphi %s4276_s9, %s5374_s9   ;;  %s4196_s30 = sphi %s4274_s30, %s5373_s30   ;;  %s4192_s29 = sphi %s4272_s29, %s5372_s29   ;;  %s4188_s28 = sphi %s4270_s28, %s5371_s28   ;;  %s4184_s27 = sphi %s4268_s27, %s5370_s27  }
   0xe   : > { %p3119_p0 = scmp.ge.s32.totalorder %s4204_s10, 1  ;;  %p4302_p1 = scmp.eq.s32.totalorder %s5339_s11, 0 }
   0xf   : > { %p256_p2 = scmp.lt.s32.totalorder %s4204_s10, 3  ;;  %s4206_s14 = smov [#allocation6]  }
  0x10   : > { %s5350_s12 = scalar_select %p4302_p1, 1, 0 }
  0x11   : > { %p4307_p3 = pnand %p3119_p0, %p256_p2  ;;  %s268_s15 = sshll.u32 %s4206_s14, 4  ;;  %s4311_s15 = int_to_ptr.vmem [resolvable:$true] %s268_s15 }
  0x12   : > { %s4207_s17 = smov [#allocation9]   ;;  %s4208_s19 = smov [#allocation12]  }
  0x13   : > { %s5351_s13 = scalar_select %p4307_p3, 1, 0 }
  0x14   : > { %p3699_p4 = pneg %p4307_p3  ;;  %s295_s18 = sshll.u32 %s4207_s17, 4  ;;  %s4322_s18 = int_to_ptr.vmem [resolvable:$true] %s295_s18 }
  0x15   : > { %s4324_s20 = sshll.u32 %s4208_s19, 4  ;;  %s5353_s1 = sld [smem:[#allocation25_spill]]  ;;  %s320_s20 = int_to_ptr.vmem [resolvable:$true] %s4324_s20 }
  0x16   : > { %p4318_p6 = pnand %p3699_p4, %p4302_p1 }
  0x18   : > { %p4334_p8 = pneg %p4318_p6 }
  0x1b   : > { %s3880_s23 = scalar_lea.hbm %s5353_s1, 2048 }
  0x1c   : > { %p3881_p7 = scmp.ne.s32.totalorder %s5353_s1, %s3880_s23  ;;  %p3887_p11 = scmp.lt.u32.totalorder %s3880_s23, %s5353_s1 }
  0x1e   : > { %p3883_p9 = pnand %p4334_p8, %p3881_p7 }
  0x20   : > { %p3884_p10 = pneg %p3883_p9 }
  0x22   : > { %p3889_p12 = pnand %p3887_p11, %p3884_p10 }
  0x24   : > { %3892 = shalt.err (!%p3889_p12)
}
  0x25   : > { %s3893_s19 = scalar_lea.vmem %s4311_s15, 2048  ;;  %p3901_p4 = scmp.lt.s32.totalorder %s4311_s15, %s4311_s15 }
  0x26   : > { %p3894_p13 = scmp.ne.s32.totalorder %s4311_s15, %s3893_s19  ;;  %p3902_p5 = scmp.lt.s32.totalorder %s3893_s19, %s3893_s19 }
  0x28   : > { %p3896_p0 = pnand %p3894_p13, %p4334_p8  ;;  %p3903_p7 = por %p3902_p5, %p3901_p4 }
  0x2a   : > { %p3897_p2 = pneg %p3896_p0 }
  0x2c   : > { %p3904_p9 = pnand %p3903_p7, %p3897_p2 }
  0x2e   : > { %3907 = shalt.err (!%p3904_p9)
}
  0x2f   : > { %s5344_s21 = smov 64   ;;  %s4210_s22 = smov 4  }
  0x30   : > { %3702 = dma.hbm_to_vmem [thread:$0]  (!%p4318_p6), %s5353_s1, 2048, %s4311_s15, [#allocation7], %s5344_s21, %s5344_s21, %s4210_s22  }
  0x31   : > { %s3908_s17 = scalar_lea.hbm %s5333_s3, 16 }
  0x32   : > { %p3909_p5 = scmp.ne.s32.totalorder %s5333_s3, %s3908_s17  ;;  %p3915_p12 = scmp.lt.u32.totalorder %s3908_s17, %s5333_s3 }
  0x34   : > { %p3911_p10 = pnand %p3909_p5, %p4334_p8 }
  0x36   : > { %p3912_p11 = pneg %p3911_p10 }
  0x38   : > { %p3917_p13 = pnand %p3915_p12, %p3912_p11 }
  0x3a   : > { %3920 = shalt.err (!%p3917_p13)
}
  0x3b   : > { %s3921_s15 = scalar_lea.vmem %s4322_s18, 16  ;;  %s3928_s11 = scalar_lea.vmem %s4322_s18, 32 }
  0x3c   : > { %p3922_p0 = scmp.ne.s32.totalorder %s4322_s18, %s3921_s15  ;;  %p3929_p7 = scmp.lt.s32.totalorder %s4322_s18, %s4322_s18 }
  0x3d   : > { %p3930_p9 = scmp.lt.s32.totalorder %s3928_s11, %s3921_s15 }
  0x3e   : > { %p3924_p2 = pnand %p3922_p0, %p4334_p8 }
  0x3f   : > { %p3931_p5 = por %p3930_p9, %p3929_p7 }
  0x40   : > { %p3925_p4 = pneg %p3924_p2 }
  0x42   : > { %p3932_p10 = pnand %p3931_p5, %p3925_p4 }
  0x44   : > { %3935 = shalt.err (!%p3932_p10)
}
  0x45   : > { %3708 = dma.hbm_to_vmem [thread:$0]  (!%p4318_p6), %s5333_s3, 16, %s4322_s18, [#allocation10]  }
  0x46   : > { %s3936_s25 = scalar_lea.hbm %s5335_s5, 16 }
  0x47   : > { %p3937_p11 = scmp.ne.s32.totalorder %s5335_s5, %s3936_s25  ;;  %p3943_p0 = scmp.lt.u32.totalorder %s3936_s25, %s5335_s5 }
  0x49   : > { %p3939_p12 = pnand %p3937_p11, %p4334_p8 }
  0x4b   : > { %p3940_p13 = pneg %p3939_p12 }
  0x4d   : > { %p3945_p2 = pnand %p3943_p0, %p3940_p13 }
  0x4f   : > { %3948 = shalt.err (!%p3945_p2)
}
  0x50   : > { %s3949_s11 = scalar_lea.vmem %s320_s20, 16  ;;  %s3956_s18 = scalar_lea.vmem %s320_s20, 32 }
  0x51   : > { %p3950_p4 = scmp.ne.s32.totalorder %s320_s20, %s3949_s11  ;;  %p3957_p5 = scmp.lt.s32.totalorder %s320_s20, %s320_s20 }
  0x52   : > { %p3958_p10 = scmp.lt.s32.totalorder %s3956_s18, %s3949_s11 }
  0x53   : > { %p3952_p7 = pnand %p3950_p4, %p4334_p8 }
  0x54   : > { %p3959_p3 = por %p3958_p10, %p3957_p5 }
  0x55   : > { %p3953_p9 = pneg %p3952_p7 }
  0x57   : > { %p3960_p1 = pnand %p3959_p3, %p3953_p9 }
  0x59   : > { %3963 = shalt.err (!%p3960_p1)
}
  0x5a   : > { %3714 = dma.hbm_to_vmem [thread:$0]  (!%p4318_p6), %s5335_s5, 16, %s320_s20, [#allocation13]  }
  0x5b   : > { %s4211_s23 = smov [#allocation8]   ;;  %s4212_s25 = smov [#allocation11]  }
  0x5c   : > { %s281_s24 = sshll.u32 %s4211_s23, 4  ;;  %s305_s14 = sshll.u32 %s4212_s25, 4  ;;  %s282_s24 = int_to_ptr.vmem [resolvable:$true] %s281_s24  ;;  %s306_s14 = int_to_ptr.vmem [resolvable:$true] %s305_s14 }
  0x5d   : > { %s3964_s15 = scalar_lea.hbm %s5332_s2, 256 }
  0x5e   : > { %p3965_p1 = scmp.ne.s32.totalorder %s5332_s2, %s3964_s15  ;;  %p3971_p12 = scmp.lt.u32.totalorder %s3964_s15, %s5332_s2 }
  0x60   : > { %p3967_p3 = pnand %p3965_p1, %p4334_p8 }
  0x62   : > { %p3968_p11 = pneg %p3967_p3 }
  0x64   : > { %p3973_p13 = pnand %p3971_p12, %p3968_p11 }
  0x66   : > { %3976 = shalt.err (!%p3973_p13)
}
  0x67   : > { %s3977_s20 = scalar_lea.vmem %s282_s24, 256  ;;  %p3985_p7 = scmp.lt.s32.totalorder %s282_s24, %s282_s24 }
  0x68   : > { %p3978_p0 = scmp.ne.s32.totalorder %s282_s24, %s3977_s20  ;;  %p3986_p9 = scmp.lt.s32.totalorder %s3977_s20, %s3977_s20 }
  0x6a   : > { %p3980_p2 = pnand %p3978_p0, %p4334_p8  ;;  %p3987_p5 = por %p3986_p9, %p3985_p7 }
  0x6c   : > { %p3981_p4 = pneg %p3980_p2 }
  0x6e   : > { %p3988_p10 = pnand %p3987_p5, %p3981_p4 }
  0x70   : > { %3991 = shalt.err (!%p3988_p10)
}
  0x71   : > { %s5355_s30 = smov 64   ;;  %s3992_s19 = scalar_lea.hbm %s5334_s4, 512 }
  0x72   : > { %3705 = dma.hbm_to_vmem [thread:$0]  (!%p4318_p6), %s5332_s2, 256, %s282_s24, [#allocation7], %s5355_s30, %s5355_s30, %s4210_s22  }
  0x73   : > { %p3993_p1 = scmp.ne.s32.totalorder %s5334_s4, %s3992_s19  ;;  %p3999_p12 = scmp.lt.u32.totalorder %s3992_s19, %s5334_s4 }
  0x75   : > { %p3995_p3 = pnand %p3993_p1, %p4334_p8 }
  0x77   : > { %p3996_p11 = pneg %p3995_p3 }
  0x79   : > { %p4001_p13 = pnand %p3999_p12, %p3996_p11 }
  0x7b   : > { %4004 = shalt.err (!%p4001_p13)
}
  0x7c   : > { %s4005_s20 = scalar_lea.vmem %s306_s14, 512  ;;  %p4013_p7 = scmp.lt.s32.totalorder %s306_s14, %s306_s14 }
  0x7d   : > { %p4006_p0 = scmp.ne.s32.totalorder %s306_s14, %s4005_s20  ;;  %p4014_p9 = scmp.lt.s32.totalorder %s4005_s20, %s4005_s20 }
  0x7f   : > { %p4008_p2 = pnand %p4006_p0, %p4334_p8  ;;  %p4015_p5 = por %p4014_p9, %p4013_p7 }
  0x81   : > { %p4009_p4 = pneg %p4008_p2 }
  0x83   : > { %p4016_p10 = pnand %p4015_p5, %p4009_p4 }
  0x85   : > { %4019 = shalt.err (!%p4016_p10)
}
  0x86   : > { %3711 = dma.hbm_to_vmem [thread:$0]  (!%p4318_p6), %s5334_s4, 512, %s306_s14, [#allocation10], %s5355_s30, %s5355_s30, %s4210_s22  }
  0x87   : > { %s4213_s23 = smov [#allocation14]   ;;  %s4214_s17 = smov [#allocation15]  }
  0x88   : > { %s331_s25 = sshll.u32 %s4213_s23, 4  ;;  %s347_s19 = sshll.u32 %s4214_s17, 4  ;;  %s332_s25 = int_to_ptr.vmem [resolvable:$true] %s331_s25  ;;  %s348_s19 = int_to_ptr.vmem [resolvable:$true] %s347_s19 }
  0x89   : > { %s4020_s18 = scalar_lea.hbm %s5336_s6, 256 }
  0x8a   : > { %p4021_p1 = scmp.ne.s32.totalorder %s5336_s6, %s4020_s18  ;;  %p4027_p12 = scmp.lt.u32.totalorder %s4020_s18, %s5336_s6 }
  0x8c   : > { %p4023_p3 = pnand %p4021_p1, %p4334_p8 }
  0x8e   : > { %p4024_p11 = pneg %p4023_p3 }
  0x90   : > { %p4029_p13 = pnand %p4027_p12, %p4024_p11 }
  0x92   : > { %4032 = shalt.err (!%p4029_p13)
}
  0x93   : > { %s4033_s14 = scalar_lea.vmem %s332_s25, 256  ;;  %p4041_p7 = scmp.lt.s32.totalorder %s332_s25, %s332_s25 }
  0x94   : > { %p4034_p0 = scmp.ne.s32.totalorder %s332_s25, %s4033_s14  ;;  %p4042_p9 = scmp.lt.s32.totalorder %s4033_s14, %s4033_s14 }
  0x96   : > { %p4036_p2 = pnand %p4034_p0, %p4334_p8  ;;  %p4043_p5 = por %p4042_p9, %p4041_p7 }
  0x98   : > { %p4037_p4 = pneg %p4036_p2 }
  0x9a   : > { %p4044_p10 = pnand %p4043_p5, %p4037_p4 }
  0x9c   : > { %4047 = shalt.err (!%p4044_p10)
}
  0x9d   : > { %3717 = dma.hbm_to_vmem [thread:$0]  (!%p4318_p6), %s5336_s6, 256, %s332_s25, [#allocation13], %s5355_s30, %s5355_s30, %s4210_s22  }
  0x9e   : > { %s4048_s15 = scalar_lea.hbm %s5337_s7, 16 }
  0x9f   : > { %p4049_p1 = scmp.ne.s32.totalorder %s5337_s7, %s4048_s15  ;;  %p4055_p12 = scmp.lt.u32.totalorder %s4048_s15, %s5337_s7 }
  0xa1   : > { %p4051_p3 = pnand %p4049_p1, %p4334_p8 }
  0xa3   : > { %p4052_p11 = pneg %p4051_p3 }
  0xa5   : > { %p4057_p13 = pnand %p4055_p12, %p4052_p11 }
  0xa7   : > { %4060 = shalt.err (!%p4057_p13)
}
  0xa8   : > { %s4061_s24 = scalar_lea.vmem %s348_s19, 16  ;;  %s4068_s22 = scalar_lea.vmem %s348_s19, 32 }
  0xa9   : > { %p4062_p0 = scmp.ne.s32.totalorder %s348_s19, %s4061_s24  ;;  %p4069_p7 = scmp.lt.s32.totalorder %s348_s19, %s348_s19 }
  0xaa   : > { %p4070_p9 = scmp.lt.s32.totalorder %s4068_s22, %s4061_s24 }
  0xab   : > { %p4064_p2 = pnand %p4062_p0, %p4334_p8 }
  0xac   : > { %p4071_p5 = por %p4070_p9, %p4069_p7 }
  0xad   : > { %p4065_p4 = pneg %p4064_p2 }
  0xaf   : > { %p4072_p10 = pnand %p4071_p5, %p4065_p4 }
  0xb1   : > { %4075 = shalt.err (!%p4072_p10)
}
  0xb2   : > { %3720 = dma.hbm_to_vmem [thread:$0]  (!%p4318_p6), %s5337_s7, 16, %s348_s19, [#allocation16]  }
  0xb3   : > { %s3118_s26 = sadd.s32 4294967294, %s4204_s10   ;;  %s40_s14 = sadd.s32 1, %s4200_s9 }
  0xb4   : > { %s47_s16 = sadd.s32 1, %s4192_s29  ;;  %p42_p8 = scmp.ge.s32.totalorder %s40_s14, 2 }
  0xb5   : > { %p54_p1 = scmp.ne.s32.totalorder %s4192_s29, %s4188_s28  ;;  %p55_p3 = scmp.eq.s32.totalorder %s4204_s10, 0 }
  0xb6   : > { %p60_p11 = scmp.ne.s32.totalorder %s4188_s28, %s4184_s27  ;;  %s5376_s14 = smov (%p42_p8, %s40_s14), 0 }
  0xb7   : > { %p4492_p12 = por %p55_p3, %p54_p1  ;;  %p5357_p13 = scmp.ne.s32.totalorder %s5350_s12, 0 }
  0xb8   : > { %s44_s21 = ssub.s32 %s4200_s9, %s5376_s14  ;;  %s5359_s23 = sadd.s32 4294967295, %s4204_s10  }
  0xb9   : > { %p4498_p6 = por %p5357_p13, %p60_p11  ;;  %p243_p0 = scmp.eq.s32.totalorder %s5359_s23, 1 }
  0xba   : > { %p45_p2 = scmp.eq.s32.totalorder %s44_s21, 0  ;;  %p249_p4 = scmp.eq.s32.totalorder %s3118_s26, 1 }
  0xbb   : > { %p4506_p7 = por %p243_p0, %p54_p1  ;;  %p3736_p9 = scmp.lt.s32.totalorder %s4204_s10, 2 }
  0xbc   : > { %s4512_s15 = scalar_select %p45_p2, %s4192_s29, %s47_s16  }
  0xbd   : > { %s5360_s17 = scalar_select %p4506_p7, 1, 0 }
  0xbe   : > { %p4514_p5 = por %p249_p4, %p60_p11  ;;  %s358_s18 = sand.u32 1, %s4192_s29  }
  0xbf   : > { %s3128_s8 = sshll.u32 %s358_s18, 8  ;;  %s3237_s20 = sshll.u32 %s4200_s9, 12 }
  0xc0   : > { %s5361_s11 = scalar_select %p4514_p5, 1, 0 }
  0xc1   : > { %s4523_s30 = scalar_lea.hbm %s5330_s0, %s3237_s20  ;;  %s362_s25 = scalar_lea.vmem [#allocation3], %s3128_s8 }
  0xc2   : > { %s369_s26 = sshll.u32 %s362_s25, 4  ;;  %p4529_p10 = pnand %p3736_p9, %p4492_p12  ;;  %s4525_s26 = int_to_ptr.vmem [resolvable:$true] %s369_s26 }
  0xc3   : > { %s4533_s21 = scalar_lea.sflag [#allocation4], %s358_s18  ;;  %s4076_s23 = scalar_lea.hbm %s4523_s30, 4096 }
  0xc4   : > { %p4077_p8 = scmp.ne.s32.totalorder %s4523_s30, %s4076_s23  ;;  %p4078_p1 = pneg %p4529_p10 }
  0xc5   : > { %s4081_s1 = scalar_lea.hbm %s5330_s0, 8192  ;;  %p4082_p12 = scmp.lt.u32.totalorder %s4523_s30, %s5330_s0 }
  0xc6   : > { %p4079_p3 = pnand %p4078_p1, %p4077_p8  ;;  %p4083_p13 = scmp.lt.u32.totalorder %s4081_s1, %s4076_s23 }
  0xc7   : > { %p4085_p2 = scmp.lt.u32.totalorder %s4076_s23, %s4523_s30 }
  0xc8   : > { %p4080_p11 = pneg %p4079_p3  ;;  %p4084_p0 = por %p4083_p13, %p4082_p12 }
  0xca   : > { %p4086_p4 = por %p4085_p2, %p4084_p0 }
  0xcc   : > { %p4087_p9 = pnand %p4086_p4, %p4080_p11 }
  0xce   : > { %4090 = shalt.err (!%p4087_p9)
}
  0xcf   : > { %s4091_s18 = scalar_lea.vmem %s4525_s26, 4096  ;;  %s4215_s25 = smov [#allocation3]  }
  0xd0   : > { %p4092_p8 = scmp.ne.s32.totalorder %s4525_s26, %s4091_s18  ;;  %s4096_s8 = sshll.u32 %s4215_s25, 4  ;;  %s4097_s8 = int_to_ptr.vmem [resolvable:$false] %s4096_s8 }
  0xd1   : > { %s4098_s20 = scalar_lea.vmem %s4097_s8, 8192  ;;  %p4099_p7 = scmp.lt.s32.totalorder %s4525_s26, %s4097_s8 }
  0xd2   : > { %p4094_p3 = pnand %p4092_p8, %p4078_p1  ;;  %p4100_p12 = scmp.lt.s32.totalorder %s4098_s20, %s4091_s18 }
  0xd4   : > { %p4095_p5 = pneg %p4094_p3  ;;  %p4101_p13 = por %p4100_p12, %p4099_p7 }
  0xd6   : > { %p4102_p0 = pnand %p4101_p13, %p4095_p5 }
  0xd8   : > { %4105 = shalt.err (!%p4102_p0)
}
  0xd9   : > { %s4216_s23 = smov 128   ;;  %s4217_s1 = smov 8  }
  0xda   : > { %3724 = dma.hbm_to_vmem [thread:$0]  (!%p4529_p10), %s4523_s30, 4096, %s4525_s26, %s4533_s21, %s4216_s23, %s4216_s23, %s4217_s1  }
  0xdb   : > { %p5363_p1 = scmp.ne.s32.totalorder %s5351_s13, 0 }
  0xdc   : > { %s4564_s24 = sand.u32 (!%p5363_p1), 1, %s4188_s28  }
  0xdd   : > { %381 = sbr.rel (%p5363_p1) target bundleno = 1275 (0x4fb), region = 52  ;;  %s3132_s22 = sshll.u32 (!%p5363_p1), %s4564_s24, 8 }
  0xde   : > { %s384_s18 = scalar_lea.sflag (!%p5363_p1), [#allocation4], %s4564_s24  ;;  %s4570_s25 = scalar_lea.vmem (!%p5363_p1), [#allocation3], %s3132_s22 }
  0xe4   : > { %4159 = dma.done.wait (%p4498_p6), %s384_s18, 4096  }
  0xe5   : > { %4161 = vsyncadd (%p4498_p6), %s384_s18, 4294963200  ;;  %p5364_p7 = scmp.ne.s32.totalorder %s5350_s12, 0 }
  0xe7   : > { %4163 = dma.done.wait (%p5364_p7), [#allocation7], 2304  }
  0xe8   : > { %4165 = vsyncadd (%p5364_p7), [#allocation7], 4294964992 }
  0xe9   : > { %4167 = dma.done.wait (%p5364_p7), [#allocation10], 528  }
  0xea   : > { %4169 = vsyncadd (%p5364_p7), [#allocation10], 4294966768 }
  0xeb   : > { %4171 = dma.done.wait (%p5364_p7), [#allocation13], 272  }
  0xec   : > { %4173 = vsyncadd (%p5364_p7), [#allocation13], 4294967024 }
  0xed   : > { %4175 = dma.done.wait (%p5364_p7), [#allocation16], 16  }
  0xee   : > { %4177 = vsyncadd (%p5364_p7), [#allocation16], 4294967280  ;;  %v4218_v0 = vmov 0.0   ;;  %vm4219_vm0 = vmmov 0   ;;  %v4599_v1 = vld [vmem:[%s4570_s25] sm:$0xff]  ;;  %vm555_vm1 = vcmask 1043456  }
  0xef   : > { %3359 = vmatprep.subr.bf16.mxu0 %v4218_v0  ;;  %3365 = vmatprep.subr.bf16.mxu1 %v4218_v0  ;;  %v4602_v2 = vld [vmem:[%s4570_s25 + $0x8] sm:$0xff]  ;;  %v519_v3 = vpack.c.bf16 %v4599_v1, %v4599_v1  ;;  %v4609_v5 = vld [vmem:[%s4570_s25 + $0x10] sm:$0xff]  ;;  %v4612_v6 = vld [vmem:[%s4570_s25 + $0x18] sm:$0xff]  ;;  %vm551_vm2 = vcmask 64512   ;;  %vm2096_vm3 = vcmask 261120   ;;  %vm2393_vm4 = vcmask 523264  }
  0xf0   : > { %3361 = vmatprep.mubr.msk.bf16.mxu0 %vm4219_vm0, %v4218_v0  ;;  %3367 = vmatprep.mubr.msk.bf16.mxu1 %vm4219_vm0, %v4218_v0  ;;  %v520_v4 = vpack.c.bf16 %v4602_v2, %v4602_v2  ;;  %v521_v7 = vpack.c.bf16 %v4609_v5, %v4609_v5  ;;  %v522_v8 = vpack.c.bf16 %v4612_v6, %v4612_v6  ;;  %v487_v11 = vld [vmem:[#allocation6] sm:$0xf]  ;;  %v488_v12 = vld [vmem:[#allocation6 + $0x4] sm:$0xf]  ;;  %v4628_v16 = vld [vmem:[%s4570_s25 + $0x28] sm:$0xff]  ;;  %s5210_s12 = scalar_lea.vmem [#allocation17], %s3132_s22 }
  0xf1   : > { %v557_v9 = vsel %vm555_vm1, %v519_v3, 0  ;;  %v4625_v15 = vld [vmem:[%s4570_s25 + $0x20] sm:$0xff]  ;;  %v524_v18 = vpack.c.bf16 %v4628_v16, %v4628_v16  ;;  %v489_v19 = vld [vmem:[#allocation6 + $0x8] sm:$0xf]  ;;  %v490_v20 = vld [vmem:[#allocation6 + $0xc] sm:$0xf] }
  0xf2   : > { %v603_v10 = vsel %vm555_vm1, %v520_v4, 0  ;;  %3360 = vmatpush3.bf16.msra.mxu0 %v557_v9  ;;  %v649_v13 = vsel %vm555_vm1, %v521_v7, 0  ;;  %v695_v14 = vsel %vm555_vm1, %v522_v8, 0  ;;  %v523_v17 = vpack.c.bf16 %v4625_v15, %v4625_v15  ;;  %v4645_v23 = vld [vmem:[%s4570_s25 + $0x30] sm:$0xff]  ;;  %v4648_v24 = vld [vmem:[%s4570_s25 + $0x38] sm:$0xff]  ;;  %v4665_v31 = vld [vmem:[%s4570_s25 + $0x40] sm:$0xff] }
  0xf3   : > { %3366 = vmatpush3.bf16.msra.mxu1 %v603_v10  ;;  %3371 = vmatprep.subr.bf16.mxu0 %v4218_v0  ;;  %v787_v22 = vsel %vm555_vm1, %v524_v18, 0  ;;  %v525_v25 = vpack.c.bf16 %v4645_v23, %v4645_v23  ;;  %v526_v26 = vpack.c.bf16 %v4648_v24, %v4648_v24  ;;  %v491_v27 = vld [vmem:[#allocation6 + $0x10] sm:$0xf]  ;;  %v492_v28 = vld [vmem:[#allocation6 + $0x14] sm:$0xf]  ;;  %v4668_v32 = vld [vmem:[%s4570_s25 + $0x48] sm:$0xff]  ;;  %v527_v33 = vpack.c.bf16 %v4665_v31, %v4665_v31 }
  0xf4   : > { %3377 = vmatprep.subr.bf16.mxu1 %v4218_v0  ;;  %v741_v21 = vsel %vm555_vm1, %v523_v17, 0  ;;  %v528_v34 = vpack.c.bf16 %v4668_v32, %v4668_v32  ;;  %v493_v35 = vld [vmem:[#allocation6 + $0x18] sm:$0xf]  ;;  %v494_v36 = vld [vmem:[#allocation6 + $0x1c] sm:$0xf]  ;;  %v4685_v39 = vld [vmem:[%s4570_s25 + $0x50] sm:$0xff] }
  0xf5   : > { %3362 = vmatmul.mubr.msk.bf16.vlgmr.msra.gmra.mrb[0].mxu0 %vm551_vm2, %v487_v11  ;;  %v833_v29 = vsel %vm555_vm1, %v525_v25, 0  ;;  %v879_v30 = vsel %vm555_vm1, %v526_v26, 0  ;;  %v925_v37 = vsel %vm555_vm1, %v527_v33, 0  ;;  %v4688_v40 = vld [vmem:[%s4570_s25 + $0x58] sm:$0xff]  ;;  %v529_v41 = vpack.c.bf16 %v4685_v39, %v4685_v39  ;;  %v495_v43 = vld [vmem:[#allocation6 + $0x20] sm:$0xf] }
  0xf6   : > { %3368 = vmatmul.mubr.msk.bf16.vlgmr.msra.gmra.mrb[0].mxu1 %vm551_vm2, %v488_v12  ;;  %3372 = vmatpush3.bf16.msra.mxu0 %v649_v13  ;;  %v971_v38 = vsel %vm555_vm1, %v528_v34, 0  ;;  %v530_v42 = vpack.c.bf16 %v4688_v40, %v4688_v40  ;;  %v496_v44 = vld [vmem:[#allocation6 + $0x24] sm:$0xf]  ;;  %v4708_v48 = vld [vmem:[%s4570_s25 + $0x68] sm:$0xff]  ;;  %v4725_v55 = vld [vmem:[%s4570_s25 + $0x70] sm:$0xff]  ;;  %s5365_s13 = sld [smem:[#allocation24_spill]] }
  0xf7   : > { %3378 = vmatpush3.bf16.msra.mxu1 %v695_v14  ;;  %3373 = vmatprep.mubr.msk.bf16.mxu0 %vm4219_vm0, %v4218_v0  ;;  %v1017_v45 = vsel %vm555_vm1, %v529_v41, 0  ;;  %v4705_v47 = vld [vmem:[%s4570_s25 + $0x60] sm:$0xff]  ;;  %v532_v50 = vpack.c.bf16 %v4708_v48, %v4708_v48  ;;  %v497_v51 = vld [vmem:[#allocation6 + $0x28] sm:$0xf]  ;;  %v498_v52 = vld [vmem:[#allocation6 + $0x2c] sm:$0xf]  ;;  %v533_v57 = vpack.c.bf16 %v4725_v55, %v4725_v55 }
  0xf8   : > { %3379 = vmatprep.mubr.msk.bf16.mxu1 %vm4219_vm0, %v4218_v0  ;;  %3383 = vmatprep.subr.bf16.mxu0 %v4218_v0  ;;  %v1063_v46 = vsel %vm555_vm1, %v530_v42, 0  ;;  %v531_v49 = vpack.c.bf16 %v4705_v47, %v4705_v47  ;;  %v4728_v56 = vld [vmem:[%s4570_s25 + $0x78] sm:$0xff]  ;;  %v499_v59 = vld [vmem:[#allocation6 + $0x30] sm:$0xf]  ;;  %v500_v60 = vld [vmem:[#allocation6 + $0x34] sm:$0xf] }
  0xf9   : > { %3389 = vmatprep.subr.bf16.mxu1 %v4218_v0  ;;  %v1155_v54 = vsel %vm555_vm1, %v532_v50, 0  ;;  %v534_v58 = vpack.c.bf16 %v4728_v56, %v4728_v56  ;;  %v1201_v61 = vsel %vm555_vm1, %v533_v57, 0  ;;  %v4745_v63 = vld [vmem:[%s4570_s25 + $0x80] sm:$0xff]  ;;  %v4748_v3 = vld [vmem:[%s4570_s25 + $0x88] sm:$0xff]  ;;  %v501_v8 = vld [vmem:[#allocation6 + $0x38] sm:$0xf] }
  0xfa   : > { %v1109_v53 = vsel %vm555_vm1, %v531_v49, 0  ;;  %v535_v4 = vpack.c.bf16 %v4745_v63, %v4745_v63  ;;  %v536_v7 = vpack.c.bf16 %v4748_v3, %v4748_v3  ;;  %v502_v9 = vld [vmem:[#allocation6 + $0x3c] sm:$0xf]  ;;  %v4765_v12 = vld [vmem:[%s4570_s25 + $0x90] sm:$0xff]  ;;  %v503_v18 = vld [vmem:[#allocation6 + $0x40] sm:$0xf] }
  0xfb   : > { %v1247_v62 = vsel %vm555_vm1, %v534_v58, 0  ;;  %v4768_v13 = vld [vmem:[%s4570_s25 + $0x98] sm:$0xff]  ;;  %v537_v14 = vpack.c.bf16 %v4765_v12, %v4765_v12  ;;  %v4788_v25 = vld [vmem:[%s4570_s25 + $0xa8] sm:$0xff]  ;;  %v4805_v34 = vld [vmem:[%s4570_s25 + $0xb0] sm:$0xff]  ;;  %s2963_s30 = sshll.u32 %s5210_s12, 4  ;;  %s5366_s21 = sld [smem:[#allocation26_spill]]  ;;  %s5277_s30 = int_to_ptr.vmem [resolvable:$true] %s2963_s30 }
  0xfc   : > { %v1293_v10 = vsel %vm555_vm1, %v535_v4, 0  ;;  %v1339_v11 = vsel %vm555_vm1, %v536_v7, 0  ;;  %v538_v17 = vpack.c.bf16 %v4768_v13, %v4768_v13  ;;  %v508_v41 = vld [vmem:[#allocation6 + $0x54] sm:$0xf]  ;;  %v509_v50 = vld [vmem:[#allocation6 + $0x58] sm:$0xf] }
  0xfd   : > { %3374 = vmatmul.mubr.msk.bf16.vlgmr.msra.gmra.mrb[4].mxu0 %vm551_vm2, %v489_v19  ;;  %v504_v19 = vld [vmem:[#allocation6 + $0x44] sm:$0xf]  ;;  %v4848_v57 = vld [vmem:[%s4570_s25 + $0xd8] sm:$0xff]  ;;  %s3238_s19 = sshll.u32 %s5365_s13, 12  ;;  %s2949_s20 = scalar_lea.sflag [#allocation5], %s4564_s24 }
  0xfe   : > { %3380 = vmatmul.mubr.msk.bf16.vlgmr.msra.gmra.mrb[4].mxu1 %vm551_vm2, %v490_v20  ;;  %3384 = vmatpush3.bf16.msra.mxu0 %v741_v21  ;;  %v1385_v20 = vsel %vm555_vm1, %v537_v14, 0  ;;  %v1431_v21 = vsel %vm555_vm1, %v538_v17, 0  ;;  %v4865_v7 = vld [vmem:[%s4570_s25 + $0xe0] sm:$0xff]  ;;  %v514_v14 = vld [vmem:[#allocation6 + $0x6c] sm:$0xf]  ;;  %s4106_s23 = scalar_lea.vmem %s5277_s30, 4096 }
  0xff   : > { %3390 = vmatpush3.bf16.msra.mxu1 %v787_v22  ;;  %3385 = vmatprep.mubr.msk.bf16.mxu0 %vm4219_vm0, %v4218_v0  ;;  %v4785_v22 = vld [vmem:[%s4570_s25 + $0xa0] sm:$0xff]  ;;  %p4107_p6 = scmp.ne.s32.totalorder %s5277_s30, %s4106_s23  ;;  %p5367_p5 = scmp.ne.s32.totalorder %s5360_s17, 0 }
 0x100   : > { %3391 = vmatprep.mubr.msk.bf16.mxu1 %vm4219_vm0, %v4218_v0  ;;  %3395 = vmatprep.subr.bf16.mxu0 %v4218_v0  ;;  %v539_v26 = vpack.c.bf16 %v4785_v22, %v4785_v22  ;;  %s4220_s1 = smov [#allocation17]  }
 0x101   : > { %3401 = vmatprep.subr.bf16.mxu1 %v4218_v0  ;;  %s5275_s8 = scalar_lea.hbm %s5366_s21, %s3238_s19  ;;  %p4108_p10 = pnand %p4107_p6, %p5367_p5 }
 0x102   : > { %s4110_s22 = sshll.u32 %s4220_s1, 4  ;;  %s4111_s22 = int_to_ptr.vmem [resolvable:$false] %s4110_s22 }
 0x103   : > { %p4109_p11 = pneg %p4108_p10  ;;  %s4112_s18 = scalar_lea.vmem %s4111_s22, 8192 }
 0x104   : > { %p4113_p2 = scmp.lt.s32.totalorder %s5277_s30, %s4111_s22  ;;  %p4114_p4 = scmp.lt.s32.totalorder %s4112_s18, %s4106_s23 }
 0x105   : > { %3386 = vmatmul.mubr.msk.bf16.vlgmr.msra.gmra.mrb[8].mxu0 %vm551_vm2, %v491_v27  ;;  %v540_v27 = vpack.c.bf16 %v4788_v25, %v4788_v25 }
 0x106   : > { %3392 = vmatmul.mubr.msk.bf16.vlgmr.msra.gmra.mrb[8].mxu1 %vm551_vm2, %v492_v28  ;;  %3396 = vmatpush3.bf16.msra.mxu0 %v833_v29  ;;  %v505_v28 = vld [vmem:[#allocation6 + $0x48] sm:$0xf]  ;;  %v506_v29 = vld [vmem:[#allocation6 + $0x4c] sm:$0xf]  ;;  %p4115_p9 = por %p4114_p4, %p4113_p2 }
 0x107   : > { %3402 = vmatpush3.bf16.msra.mxu1 %v879_v30  ;;  %3397 = vmatprep.mubr.msk.bf16.mxu0 %vm4219_vm0, %v4218_v0  ;;  %v1477_v30 = vsel %vm555_vm1, %v539_v26, 0  ;;  %v1523_v33 = vsel %vm555_vm1, %v540_v27, 0  ;;  %v515_v27 = vld [vmem:[#allocation6 + $0x70] sm:$0xf] }
 0x108   : > { %3403 = vmatprep.mubr.msk.bf16.mxu1 %vm4219_vm0, %v4218_v0  ;;  %3407 = vmatprep.subr.bf16.mxu0 %v4218_v0  ;;  %p4116_p8 = pnand %p4115_p9, %p4109_p11 }
 0x109   : > { %3413 = vmatprep.subr.bf16.mxu1 %v4218_v0 }
 0x10d   : > { %3398 = vmatmul.mubr.msk.bf16.vlgmr.msra.gmra.mrb[12].mxu0 %vm551_vm2, %v493_v35  ;;  %v4808_v35 = vld [vmem:[%s4570_s25 + $0xb8] sm:$0xff] }
 0x10e   : > { %3404 = vmatmul.mubr.msk.bf16.vlgmr.msra.gmra.mrb[12].mxu1 %vm551_vm2, %v494_v36  ;;  %3408 = vmatpush3.bf16.msra.mxu0 %v925_v37  ;;  %v541_v36 = vpack.c.bf16 %v4805_v34, %v4805_v34  ;;  %v542_v37 = vpack.c.bf16 %v4808_v35, %v4808_v35 }
 0x10f   : > { %3414 = vmatpush3.bf16.msra.mxu1 %v971_v38  ;;  %3409 = vmatprep.mubr.msk.bf16.mxu0 %vm4219_vm0, %v4218_v0  ;;  %v507_v38 = vld [vmem:[#allocation6 + $0x50] sm:$0xf] }
 0x110   : > { %3415 = vmatprep.mubr.msk.bf16.mxu1 %vm4219_vm0, %v4218_v0  ;;  %3419 = vmatprep.subr.bf16.mxu0 %v4218_v0  ;;  %v1569_v42 = vsel %vm555_vm1, %v541_v36, 0  ;;  %v517_v36 = vld [vmem:[#allocation6 + $0x78] sm:$0xf] }
 0x111   : > { %3425 = vmatprep.subr.bf16.mxu1 %v4218_v0 }
 0x115   : > { %3410 = vmatmul.mubr.msk.bf16.vlgmr.msra.gmra.mrb[16].mxu0 %vm551_vm2, %v495_v43  ;;  %v1615_v43 = vsel %vm555_vm1, %v542_v37, 0  ;;  %v518_v37 = vld [vmem:[#allocation6 + $0x7c] sm:$0xf] }
 0x116   : > { %3416 = vmatmul.mubr.msk.bf16.vlgmr.msra.gmra.mrb[16].mxu1 %vm551_vm2, %v496_v44  ;;  %3420 = vmatpush3.bf16.msra.mxu0 %v1017_v45  ;;  %v4825_v44 = vld [vmem:[%s4570_s25 + $0xc0] sm:$0xff]  ;;  %v4828_v45 = vld [vmem:[%s4570_s25 + $0xc8] sm:$0xff] }
 0x117   : > { %3426 = vmatpush3.bf16.msra.mxu1 %v1063_v46  ;;  %3421 = vmatprep.mubr.msk.bf16.mxu0 %vm4219_vm0, %v4218_v0  ;;  %v543_v46 = vpack.c.bf16 %v4825_v44, %v4825_v44  ;;  %v544_v49 = vpack.c.bf16 %v4828_v45, %v4828_v45 }
 0x118   : > { %3427 = vmatprep.mubr.msk.bf16.mxu1 %vm4219_vm0, %v4218_v0  ;;  %3431 = vmatprep.subr.bf16.mxu0 %v4218_v0 }
 0x119   : > { %3437 = vmatprep.subr.bf16.mxu1 %v4218_v0 }
 0x11d   : > { %3422 = vmatmul.mubr.msk.bf16.vlgmr.msra.gmra.mrb[20].mxu0 %vm551_vm2, %v497_v51  ;;  %v510_v51 = vld [vmem:[#allocation6 + $0x5c] sm:$0xf] }
 0x11e   : > { %3428 = vmatmul.mubr.msk.bf16.vlgmr.msra.gmra.mrb[20].mxu1 %vm551_vm2, %v498_v52  ;;  %3432 = vmatpush3.bf16.msra.mxu0 %v1109_v53  ;;  %v1661_v52 = vsel %vm555_vm1, %v543_v46, 0  ;;  %v1707_v53 = vsel %vm555_vm1, %v544_v49, 0 }
 0x11f   : > { %3438 = vmatpush3.bf16.msra.mxu1 %v1155_v54  ;;  %3433 = vmatprep.mubr.msk.bf16.mxu0 %vm4219_vm0, %v4218_v0  ;;  %v4845_v54 = vld [vmem:[%s4570_s25 + $0xd0] sm:$0xff] }
 0x120   : > { %3439 = vmatprep.mubr.msk.bf16.mxu1 %vm4219_vm0, %v4218_v0  ;;  %3443 = vmatprep.subr.bf16.mxu0 %v4218_v0  ;;  %v545_v58 = vpack.c.bf16 %v4845_v54, %v4845_v54 }
 0x121   : > { %3449 = vmatprep.subr.bf16.mxu1 %v4218_v0 }
 0x125   : > { %3434 = vmatmul.mubr.msk.bf16.vlgmr.msra.gmra.mrb[24].mxu0 %vm551_vm2, %v499_v59  ;;  %v546_v59 = vpack.c.bf16 %v4848_v57, %v4848_v57 }
 0x126   : > { %3440 = vmatmul.mubr.msk.bf16.vlgmr.msra.gmra.mrb[24].mxu1 %vm551_vm2, %v500_v60  ;;  %3444 = vmatpush3.bf16.msra.mxu0 %v1201_v61  ;;  %v511_v60 = vld [vmem:[#allocation6 + $0x60] sm:$0xf]  ;;  %v512_v61 = vld [vmem:[#allocation6 + $0x64] sm:$0xf] }
 0x127   : > { %3450 = vmatpush3.bf16.msra.mxu1 %v1247_v62  ;;  %3445 = vmatprep.mubr.msk.bf16.mxu0 %vm4219_vm0, %v4218_v0  ;;  %v1753_v62 = vsel %vm555_vm1, %v545_v58, 0  ;;  %v1799_v4 = vsel %vm555_vm1, %v546_v59, 0 }
 0x128   : > { %3451 = vmatprep.mubr.msk.bf16.mxu1 %vm4219_vm0, %v4218_v0  ;;  %3455 = vmatprep.subr.bf16.mxu0 %v4218_v0 }
 0x129   : > { %3461 = vmatprep.subr.bf16.mxu1 %v4218_v0 }
 0x12d   : > { %3446 = vmatmul.mubr.msk.bf16.vlgmr.msra.gmra.mrb[28].mxu0 %vm551_vm2, %v501_v8  ;;  %v4868_v8 = vld [vmem:[%s4570_s25 + $0xe8] sm:$0xff] }
 0x12e   : > { %3452 = vmatmul.mubr.msk.bf16.vlgmr.msra.gmra.mrb[28].mxu1 %vm551_vm2, %v502_v9  ;;  %3456 = vmatpush3.bf16.msra.mxu0 %v1293_v10  ;;  %v547_v9 = vpack.c.bf16 %v4865_v7, %v4865_v7  ;;  %v548_v10 = vpack.c.bf16 %v4868_v8, %v4868_v8 }
 0x12f   : > { %3462 = vmatpush3.bf16.msra.mxu1 %v1339_v11  ;;  %3457 = vmatprep.mubr.msk.bf16.mxu0 %vm4219_vm0, %v4218_v0  ;;  %v513_v11 = vld [vmem:[#allocation6 + $0x68] sm:$0xf] }
 0x130   : > { %3463 = vmatprep.mubr.msk.bf16.mxu1 %vm4219_vm0, %v4218_v0  ;;  %3467 = vmatprep.subr.bf16.mxu0 %v4218_v0  ;;  %v1845_v17 = vsel %vm555_vm1, %v547_v9, 0 }
 0x131   : > { %3473 = vmatprep.subr.bf16.mxu1 %v4218_v0 }
 0x135   : > { %3458 = vmatmul.mubr.msk.bf16.vlgmr.msra.gmra.mrb[32].mxu0 %vm551_vm2, %v503_v18  ;;  %v1891_v18 = vsel %vm555_vm1, %v548_v10, 0 }
 0x136   : > { %3464 = vmatmul.mubr.msk.bf16.vlgmr.msra.gmra.mrb[32].mxu1 %vm551_vm2, %v504_v19  ;;  %3468 = vmatpush3.bf16.msra.mxu0 %v1385_v20  ;;  %v4885_v19 = vld [vmem:[%s4570_s25 + $0xf0] sm:$0xff]  ;;  %v4888_v20 = vld [vmem:[%s4570_s25 + $0xf8] sm:$0xff] }
 0x137   : > { %3474 = vmatpush3.bf16.msra.mxu1 %v1431_v21  ;;  %3469 = vmatprep.mubr.msk.bf16.mxu0 %vm4219_vm0, %v4218_v0  ;;  %v549_v21 = vpack.c.bf16 %v4885_v19, %v4885_v19  ;;  %v550_v26 = vpack.c.bf16 %v4888_v20, %v4888_v20 }
 0x138   : > { %3475 = vmatprep.mubr.msk.bf16.mxu1 %vm4219_vm0, %v4218_v0  ;;  %3479 = vmatprep.subr.bf16.mxu0 %v4218_v0 }
 0x139   : > { %3485 = vmatprep.subr.bf16.mxu1 %v4218_v0 }
 0x13d   : > { %3470 = vmatmul.mubr.msk.bf16.vlgmr.msra.gmra.mrb[36].mxu0 %vm551_vm2, %v505_v28  ;;  %v516_v28 = vld [vmem:[#allocation6 + $0x74] sm:$0xf] }
 0x13e   : > { %3476 = vmatmul.mubr.msk.bf16.vlgmr.msra.gmra.mrb[36].mxu1 %vm551_vm2, %v506_v29  ;;  %3480 = vmatpush3.bf16.msra.mxu0 %v1477_v30  ;;  %v1937_v29 = vsel %vm555_vm1, %v549_v21, 0  ;;  %v1983_v30 = vsel %vm555_vm1, %v550_v26, 0 }
 0x13f   : > { %3486 = vmatpush3.bf16.msra.mxu1 %v1523_v33  ;;  %3481 = vmatprep.mubr.msk.bf16.mxu0 %vm4219_vm0, %v4218_v0  ;;  %v3808_v33 = vld [vmem:[#allocation8] sm:$0xff]  }
 0x140   : > { %3487 = vmatprep.mubr.msk.bf16.mxu1 %vm4219_vm0, %v4218_v0  ;;  %3491 = vmatprep.subr.bf16.mxu0 %v4218_v0 }
 0x141   : > { %3497 = vmatprep.subr.bf16.mxu1 %v4218_v0 }
 0x145   : > { %3482 = vmatmul.mubr.msk.bf16.vlgmr.msra.gmra.mrb[40].mxu0 %vm551_vm2, %v507_v38  ;;  %v3809_v38 = vld [vmem:[#allocation8 + $0x8] sm:$0xff]  }
 0x146   : > { %3488 = vmatmul.mubr.msk.bf16.vlgmr.msra.gmra.mrb[40].mxu1 %vm551_vm2, %v508_v41  ;;  %3492 = vmatpush3.bf16.msra.mxu0 %v1569_v42 }
 0x147   : > { %3498 = vmatpush3.bf16.msra.mxu1 %v1615_v43  ;;  %3493 = vmatprep.mubr.msk.bf16.mxu0 %vm4219_vm0, %v4218_v0 }
 0x148   : > { %3499 = vmatprep.mubr.msk.bf16.mxu1 %vm4219_vm0, %v4218_v0  ;;  %3503 = vmatprep.subr.bf16.mxu0 %v4218_v0 }
 0x149   : > { %3509 = vmatprep.subr.bf16.mxu1 %v4218_v0 }
 0x14d   : > { %3494 = vmatmul.mubr.msk.bf16.vlgmr.msra.gmra.mrb[44].mxu0 %vm551_vm2, %v509_v50 }
 0x14e   : > { %3500 = vmatmul.mubr.msk.bf16.vlgmr.msra.gmra.mrb[44].mxu1 %vm551_vm2, %v510_v51  ;;  %3504 = vmatpush3.bf16.msra.mxu0 %v1661_v52 }
 0x14f   : > { %3510 = vmatpush3.bf16.msra.mxu1 %v1707_v53  ;;  %3505 = vmatprep.mubr.msk.bf16.mxu0 %vm4219_vm0, %v4218_v0 }
 0x150   : > { %3511 = vmatprep.mubr.msk.bf16.mxu1 %vm4219_vm0, %v4218_v0  ;;  %3515 = vmatprep.subr.bf16.mxu0 %v4218_v0 }
 0x151   : > { %3521 = vmatprep.subr.bf16.mxu1 %v4218_v0 }
 0x155   : > { %3506 = vmatmul.mubr.msk.bf16.vlgmr.msra.gmra.mrb[48].mxu0 %vm551_vm2, %v511_v60 }
 0x156   : > { %3512 = vmatmul.mubr.msk.bf16.vlgmr.msra.gmra.mrb[48].mxu1 %vm551_vm2, %v512_v61  ;;  %3516 = vmatpush3.bf16.msra.mxu0 %v1753_v62 }
 0x157   : > { %3522 = vmatpush3.bf16.msra.mxu1 %v1799_v4  ;;  %3517 = vmatprep.mubr.msk.bf16.mxu0 %vm4219_vm0, %v4218_v0 }
 0x158   : > { %3523 = vmatprep.mubr.msk.bf16.mxu1 %vm4219_vm0, %v4218_v0  ;;  %3527 = vmatprep.subr.bf16.mxu0 %v4218_v0 }
 0x159   : > { %3533 = vmatprep.subr.bf16.mxu1 %v4218_v0 }
 0x15d   : > { %3518 = vmatmul.mubr.msk.bf16.vlgmr.msra.gmra.mrb[52].mxu0 %vm551_vm2, %v513_v11 }
 0x15e   : > { %3524 = vmatmul.mubr.msk.bf16.vlgmr.msra.gmra.mrb[52].mxu1 %vm551_vm2, %v514_v14  ;;  %3528 = vmatpush3.bf16.msra.mxu0 %v1845_v17 }
 0x15f   : > { %3534 = vmatpush3.bf16.msra.mxu1 %v1891_v18  ;;  %3529 = vmatprep.mubr.msk.bf16.mxu0 %vm4219_vm0, %v4218_v0 }
 0x160   : > { %3535 = vmatprep.mubr.msk.bf16.mxu1 %vm4219_vm0, %v4218_v0  ;;  %3539 = vmatprep.subr.bf16.mxu0 %v4218_v0 }
 0x161   : > { %3545 = vmatprep.subr.bf16.mxu1 %v4218_v0 }
 0x165   : > { %3530 = vmatmul.mubr.msk.bf16.vlgmr.msra.gmra.mrb[56].mxu0 %vm551_vm2, %v515_v27 }
 0x166   : > { %3536 = vmatmul.mubr.msk.bf16.vlgmr.msra.gmra.mrb[56].mxu1 %vm551_vm2, %v516_v28  ;;  %3540 = vmatpush3.bf16.msra.mxu0 %v1937_v29 }
 0x167   : > { %3546 = vmatpush3.bf16.msra.mxu1 %v1983_v30  ;;  %3541 = vmatprep.mubr.msk.bf16.mxu0 %vm4219_vm0, %v4218_v0 }
 0x168   : > { %3547 = vmatprep.mubr.msk.bf16.mxu1 %vm4219_vm0, %v4218_v0  ;;  %3551 = vmatprep.subr.bf16.mxu0 %v3808_v33 }
 0x169   : > { %3663 = vmatprep.subr.bf16.mxu1 %v3808_v33 }
 0x16d   : > { %3542 = vmatmul.mubr.msk.bf16.vlgmr.msra.gmra.mrb[60].mxu0 %vm551_vm2, %v517_v36 }
 0x16e   : > { %3548 = vmatmul.mubr.msk.bf16.vlgmr.msra.gmra.mrb[60].mxu1 %vm551_vm2, %v518_v37  ;;  %3552 = vmatpush3.bf16.msra.mxu0 %v3808_v33 }
 0x16f   : > { %3665 = vmatpush3.bf16.msra.mxu1 %v3808_v33  ;;  %3553 = vmatprep.subr.bf16.mxu0 %v3809_v38 }
 0x170   : > { %3664 = vmatprep.subr.bf16.mxu1 %v3809_v38 }
 0x172   : > { %3554 = vmatpush3.bf16.msra.mxu0 %v3809_v38 }
 0x173   : > { %3666 = vmatpush3.bf16.msra.mxu1 %v3809_v38 }
 0x1c8   : > { %v593_v41 = vpop.f32.mrb[0].mxu0 }
 0x1c9   : > { %v639_v42 = vpop.f32.mrb[0].mxu1  ;;  %v4913_v43 = vadd.f32 %v593_v41, %v4599_v1  ;;  %v3363_v46 = vpop.f32.mrb[1].mxu0 }
 0x1ca   : > { %v4916_v0 = vadd.f32 %v639_v42, %v4602_v2  ;;  %v3369_v49 = vpop.f32.mrb[1].mxu1  ;;  %v596_v50 = vpop.f32.mrb[2].mxu0 }
 0x1cb   : > { %v642_v51 = vpop.f32.mrb[2].mxu1  ;;  %v3364_v53 = vpop.f32.mrb[3].mxu0 }
 0x1cc   : > { %v2057_v52 = vpack.c.bf16 %v4916_v0, %v4913_v43  ;;  %v3370_v58 = vpop.f32.mrb[3].mxu1 }
 0x1ce   : > { %3555 = vmatprep.mubr.msk.bf16.mxu0 %vm2096_vm3, %v2057_v52 }
 0x1d0   : > { %v685_v59 = vpop.f32.mrb[4].mxu0 }
 0x1d1   : > { %v731_v60 = vpop.f32.mrb[4].mxu1  ;;  %v4922_v1 = vadd.f32 %v685_v59, %v4609_v5  ;;  %v3375_v61 = vpop.f32.mrb[5].mxu0 }
 0x1d2   : > { %v4925_v2 = vadd.f32 %v731_v60, %v4612_v6  ;;  %v3381_v62 = vpop.f32.mrb[5].mxu1  ;;  %v688_v4 = vpop.f32.mrb[6].mxu0 }
 0x1d3   : > { %v734_v9 = vpop.f32.mrb[6].mxu1  ;;  %v3376_v11 = vpop.f32.mrb[7].mxu0 }
 0x1d4   : > { %v2058_v10 = vpack.c.bf16 %v4925_v2, %v4922_v1  ;;  %v3382_v14 = vpop.f32.mrb[7].mxu1 }
 0x1d6   : > { %3556 = vmatmul.mubr.msk.bf16.vlgmr.msra.gmra.mrb[64].mxu0 %vm2096_vm3, %v2058_v10 }
 0x1d8   : > { %v777_v17 = vpop.f32.mrb[8].mxu0 }
 0x1d9   : > { %v823_v18 = vpop.f32.mrb[8].mxu1  ;;  %v4931_v21 = vadd.f32 %v777_v17, %v4625_v15  ;;  %v3387_v6 = vpop.f32.mrb[9].mxu0 }
 0x1da   : > { %v4934_v5 = vadd.f32 %v823_v18, %v4628_v16  ;;  %v3393_v26 = vpop.f32.mrb[9].mxu1  ;;  %v780_v27 = vpop.f32.mrb[10].mxu0 }
 0x1db   : > { %v826_v28 = vpop.f32.mrb[10].mxu1  ;;  %v3388_v30 = vpop.f32.mrb[11].mxu0 }
 0x1dc   : > { %v2059_v29 = vpack.c.bf16 %v4934_v5, %v4931_v21  ;;  %v3394_v33 = vpop.f32.mrb[11].mxu1 }
 0x1de   : > { %3559 = vmatprep.mubr.msk.bf16.mxu0 %vm2096_vm3, %v2059_v29 }
 0x1e0   : > { %v869_v36 = vpop.f32.mrb[12].mxu0 }
 0x1e1   : > { %v915_v37 = vpop.f32.mrb[12].mxu1  ;;  %v4940_v38 = vadd.f32 %v869_v36, %v4645_v23  ;;  %v3399_v16 = vpop.f32.mrb[13].mxu0 }
 0x1e2   : > { %v4943_v15 = vadd.f32 %v915_v37, %v4648_v24  ;;  %v3405_v41 = vpop.f32.mrb[13].mxu1  ;;  %v872_v42 = vpop.f32.mrb[14].mxu0 }
 0x1e3   : > { %v918_v46 = vpop.f32.mrb[14].mxu1  ;;  %v3400_v50 = vpop.f32.mrb[15].mxu0 }
 0x1e4   : > { %v2060_v49 = vpack.c.bf16 %v4943_v15, %v4940_v38  ;;  %v3406_v51 = vpop.f32.mrb[15].mxu1 }
 0x1e6   : > { %3560 = vmatmul.mubr.msk.bf16.gmra.mrb[68].mxu0 %vm2096_vm3, %v2060_v49 }
 0x1e8   : > { %v961_v52 = vpop.f32.mrb[16].mxu0 }
 0x1e9   : > { %v1007_v53 = vpop.f32.mrb[16].mxu1  ;;  %v4949_v58 = vadd.f32 %v961_v52, %v4665_v31  ;;  %v3411_v24 = vpop.f32.mrb[17].mxu0 }
 0x1ea   : > { %v4952_v23 = vadd.f32 %v1007_v53, %v4668_v32  ;;  %v3417_v59 = vpop.f32.mrb[17].mxu1  ;;  %v964_v60 = vpop.f32.mrb[18].mxu0 }
 0x1eb   : > { %v1010_v61 = vpop.f32.mrb[18].mxu1  ;;  %v3412_v4 = vpop.f32.mrb[19].mxu0 }
 0x1ec   : > { %v2061_v62 = vpack.c.bf16 %v4952_v23, %v4949_v58  ;;  %v3418_v9 = vpop.f32.mrb[19].mxu1 }
 0x1ee   : > { %3563 = vmatprep.mubr.msk.bf16.mxu0 %vm2096_vm3, %v2061_v62 }
 0x1f0   : > { %v1053_v10 = vpop.f32.mrb[20].mxu0 }
 0x1f1   : > { %v1099_v11 = vpop.f32.mrb[20].mxu1  ;;  %v4958_v14 = vadd.f32 %v1053_v10, %v4685_v39  ;;  %v3423_v32 = vpop.f32.mrb[21].mxu0 }
 0x1f2   : > { %v4961_v31 = vadd.f32 %v1099_v11, %v4688_v40  ;;  %v3429_v17 = vpop.f32.mrb[21].mxu1  ;;  %v1056_v18 = vpop.f32.mrb[22].mxu0 }
 0x1f3   : > { %v1102_v6 = vpop.f32.mrb[22].mxu1  ;;  %v3424_v27 = vpop.f32.mrb[23].mxu0 }
 0x1f4   : > { %v2062_v26 = vpack.c.bf16 %v4961_v31, %v4958_v14  ;;  %v3430_v28 = vpop.f32.mrb[23].mxu1 }
 0x1f6   : > { %3564 = vmatmul.mubr.msk.bf16.gmra.mrb[72].mxu0 %vm2096_vm3, %v2062_v26 }
 0x1f8   : > { %v1145_v29 = vpop.f32.mrb[24].mxu0 }
 0x1f9   : > { %v1191_v30 = vpop.f32.mrb[24].mxu1  ;;  %v4967_v33 = vadd.f32 %v1145_v29, %v4705_v47  ;;  %v3435_v40 = vpop.f32.mrb[25].mxu0 }
 0x1fa   : > { %v4970_v39 = vadd.f32 %v1191_v30, %v4708_v48  ;;  %v3441_v36 = vpop.f32.mrb[25].mxu1  ;;  %v1148_v37 = vpop.f32.mrb[26].mxu0 }
 0x1fb   : > { %v1194_v16 = vpop.f32.mrb[26].mxu1  ;;  %v3436_v42 = vpop.f32.mrb[27].mxu0 }
 0x1fc   : > { %v2063_v41 = vpack.c.bf16 %v4970_v39, %v4967_v33  ;;  %v3442_v46 = vpop.f32.mrb[27].mxu1 }
 0x1fe   : > { %3567 = vmatprep.mubr.msk.bf16.mxu0 %vm2096_vm3, %v2063_v41 }
 0x200   : > { %v1237_v49 = vpop.f32.mrb[28].mxu0 }
 0x201   : > { %v1283_v50 = vpop.f32.mrb[28].mxu1  ;;  %v4976_v51 = vadd.f32 %v1237_v49, %v4725_v55  ;;  %v3447_v48 = vpop.f32.mrb[29].mxu0 }
 0x202   : > { %v4979_v47 = vadd.f32 %v1283_v50, %v4728_v56  ;;  %v3453_v52 = vpop.f32.mrb[29].mxu1  ;;  %v1240_v53 = vpop.f32.mrb[30].mxu0 }
 0x203   : > { %v1286_v24 = vpop.f32.mrb[30].mxu1  ;;  %v3448_v60 = vpop.f32.mrb[31].mxu0 }
 0x204   : > { %v2064_v59 = vpack.c.bf16 %v4979_v47, %v4976_v51  ;;  %v3454_v61 = vpop.f32.mrb[31].mxu1 }
 0x206   : > { %3568 = vmatmul.mubr.msk.bf16.gmra.mrb[76].mxu0 %vm2096_vm3, %v2064_v59 }
 0x208   : > { %v1329_v62 = vpop.f32.mrb[32].mxu0 }
 0x209   : > { %v1375_v4 = vpop.f32.mrb[32].mxu1  ;;  %v4985_v9 = vadd.f32 %v1329_v62, %v4745_v63  ;;  %v3459_v56 = vpop.f32.mrb[33].mxu0 }
 0x20a   : > { %v4988_v55 = vadd.f32 %v1375_v4, %v4748_v3  ;;  %v3465_v10 = vpop.f32.mrb[33].mxu1  ;;  %v1332_v11 = vpop.f32.mrb[34].mxu0 }
 0x20b   : > { %v1378_v32 = vpop.f32.mrb[34].mxu1  ;;  %v3460_v18 = vpop.f32.mrb[35].mxu0 }
 0x20c   : > { %v2065_v17 = vpack.c.bf16 %v4988_v55, %v4985_v9  ;;  %v3466_v6 = vpop.f32.mrb[35].mxu1 }
 0x20e   : > { %3571 = vmatprep.mubr.msk.bf16.mxu1 %vm2096_vm3, %v2065_v17 }
 0x210   : > { %v1421_v26 = vpop.f32.mrb[36].mxu0 }
 0x211   : > { %v1467_v27 = vpop.f32.mrb[36].mxu1  ;;  %v4994_v28 = vadd.f32 %v1421_v26, %v4765_v12  ;;  %v3471_v3 = vpop.f32.mrb[37].mxu0 }
 0x212   : > { %v4997_v63 = vadd.f32 %v1467_v27, %v4768_v13  ;;  %v3477_v29 = vpop.f32.mrb[37].mxu1  ;;  %v1424_v30 = vpop.f32.mrb[38].mxu0 }
 0x213   : > { %v1470_v40 = vpop.f32.mrb[38].mxu1  ;;  %v3472_v37 = vpop.f32.mrb[39].mxu0  ;;  %v3810_v29 = vld [vmem:[#allocation11] sm:$0xff]  }
 0x214   : > { %v2066_v36 = vpack.c.bf16 %v4997_v63, %v4994_v28  ;;  %v3478_v16 = vpop.f32.mrb[39].mxu1  ;;  %3587 = vmatprep.subr.bf16.mxu1 %v3810_v29  ;;  %v3811_v37 = vld [vmem:[#allocation11 + $0x8] sm:$0xff]  }
 0x216   : > { %3572 = vmatmul.mubr.msk.bf16.vlgmr.msra.gmra.mrb[64].mxu1 %vm2096_vm3, %v2066_v36 }
 0x217   : > { %3588 = vmatpush3.bf16.msra.mxu1 %v3810_v29 }
 0x218   : > { %v1513_v41 = vpop.f32.mrb[40].mxu0  ;;  %3589 = vmatprep.subr.bf16.mxu1 %v3811_v37 }
 0x219   : > { %v1559_v42 = vpop.f32.mrb[40].mxu1  ;;  %v5003_v46 = vadd.f32 %v1513_v41, %v4785_v22  ;;  %v3483_v13 = vpop.f32.mrb[41].mxu0 }
 0x21a   : > { %v5006_v12 = vadd.f32 %v1559_v42, %v4788_v25  ;;  %v3489_v49 = vpop.f32.mrb[41].mxu1  ;;  %v1516_v50 = vpop.f32.mrb[42].mxu0 }
 0x21b   : > { %v1562_v48 = vpop.f32.mrb[42].mxu1  ;;  %v3484_v53 = vpop.f32.mrb[43].mxu0  ;;  %3590 = vmatpush3.bf16.msra.mxu1 %v3811_v37  ;;  %v5056_v37 = vld [vmem:[#allocation9] ss:$0 sm:$0xff] }
 0x21c   : > { %v2067_v52 = vpack.c.bf16 %v5006_v12, %v5003_v46  ;;  %v3490_v24 = vpop.f32.mrb[43].mxu1  ;;  %v3812_v48 = vld [vmem:[#allocation11 + $0x10] sm:$0xff]  }
 0x21d   : > { %3591 = vmatprep.subr.bf16.mxu1 %v3812_v48 }
 0x21e   : > { %3575 = vmatprep.mubr.msk.bf16.mxu1 %vm2096_vm3, %v2067_v52 }
 0x21f   : > { %3592 = vmatpush3.bf16.msra.mxu1 %v3812_v48 }
 0x220   : > { %v1605_v59 = vpop.f32.mrb[44].mxu0 }
 0x221   : > { %v1651_v60 = vpop.f32.mrb[44].mxu1  ;;  %v5012_v61 = vadd.f32 %v1605_v59, %v4805_v34  ;;  %v3495_v25 = vpop.f32.mrb[45].mxu0 }
 0x222   : > { %v5015_v22 = vadd.f32 %v1651_v60, %v4808_v35  ;;  %v3501_v62 = vpop.f32.mrb[45].mxu1  ;;  %v1608_v4 = vpop.f32.mrb[46].mxu0 }
 0x223   : > { %v1654_v56 = vpop.f32.mrb[46].mxu1  ;;  %v3496_v11 = vpop.f32.mrb[47].mxu0 }
 0x224   : > { %v2068_v10 = vpack.c.bf16 %v5015_v22, %v5012_v61  ;;  %v3502_v32 = vpop.f32.mrb[47].mxu1 }
 0x226   : > { %3576 = vmatmul.mubr.msk.bf16.gmra.mrb[68].mxu1 %vm2096_vm3, %v2068_v10 }
 0x228   : > { %v1697_v17 = vpop.f32.mrb[48].mxu0 }
 0x229   : > { %v1743_v18 = vpop.f32.mrb[48].mxu1  ;;  %v5021_v6 = vadd.f32 %v1697_v17, %v4825_v44  ;;  %v3507_v35 = vpop.f32.mrb[49].mxu0 }
 0x22a   : > { %v5024_v34 = vadd.f32 %v1743_v18, %v4828_v45  ;;  %v3513_v26 = vpop.f32.mrb[49].mxu1  ;;  %v1700_v27 = vpop.f32.mrb[50].mxu0 }
 0x22b   : > { %v1746_v3 = vpop.f32.mrb[50].mxu1  ;;  %v3508_v40 = vpop.f32.mrb[51].mxu0 }
 0x22c   : > { %v2069_v30 = vpack.c.bf16 %v5024_v34, %v5021_v6  ;;  %v3514_v36 = vpop.f32.mrb[51].mxu1 }
 0x22e   : > { %3579 = vmatprep.mubr.msk.bf16.mxu1 %vm2096_vm3, %v2069_v30 }
 0x230   : > { %v1789_v44 = vpop.f32.mrb[52].mxu0 }
 0x231   : > { %v1835_v16 = vpop.f32.mrb[52].mxu1  ;;  %v5030_v45 = vadd.f32 %v1789_v44, %v4845_v54  ;;  %v3519_v42 = vpop.f32.mrb[53].mxu0  ;;  %v3813_v54 = vld [vmem:[#allocation11 + $0x18] sm:$0xff]  }
 0x232   : > { %v5033_v41 = vadd.f32 %v1835_v16, %v4848_v57  ;;  %v3525_v13 = vpop.f32.mrb[53].mxu1  ;;  %v1792_v49 = vpop.f32.mrb[54].mxu0  ;;  %3593 = vmatprep.subr.bf16.mxu1 %v3813_v54 }
 0x233   : > { %v1838_v50 = vpop.f32.mrb[54].mxu1  ;;  %v3520_v53 = vpop.f32.mrb[55].mxu0  ;;  %3594 = vmatpush3.bf16.msra.mxu1 %v3813_v54 }
 0x234   : > { %v2070_v52 = vpack.c.bf16 %v5033_v41, %v5030_v45  ;;  %v3526_v24 = vpop.f32.mrb[55].mxu1 }
 0x236   : > { %3580 = vmatmul.mubr.msk.bf16.gmra.mrb[72].mxu1 %vm2096_vm3, %v2070_v52 }
 0x238   : > { %v1881_v59 = vpop.f32.mrb[56].mxu0 }
 0x239   : > { %v1927_v60 = vpop.f32.mrb[56].mxu1  ;;  %v5039_v57 = vadd.f32 %v1881_v59, %v4865_v7  ;;  %v3531_v62 = vpop.f32.mrb[57].mxu0 }
 0x23a   : > { %v5042_v25 = vadd.f32 %v1927_v60, %v4868_v8  ;;  %v3537_v4 = vpop.f32.mrb[57].mxu1  ;;  %v1884_v56 = vpop.f32.mrb[58].mxu0 }
 0x23b   : > { %v1930_v10 = vpop.f32.mrb[58].mxu1  ;;  %v3532_v32 = vpop.f32.mrb[59].mxu0 }
 0x23c   : > { %v2071_v11 = vpack.c.bf16 %v5042_v25, %v5039_v57  ;;  %v3538_v17 = vpop.f32.mrb[59].mxu1 }
 0x23e   : > { %3583 = vmatprep.mubr.msk.bf16.mxu1 %vm2096_vm3, %v2071_v11 }
 0x240   : > { %v1973_v18 = vpop.f32.mrb[60].mxu0 }
 0x241   : > { %v2019_v35 = vpop.f32.mrb[60].mxu1  ;;  %v5048_v7 = vadd.f32 %v1973_v18, %v4885_v19  ;;  %v3543_v26 = vpop.f32.mrb[61].mxu0 }
 0x242   : > { %v5051_v8 = vadd.f32 %v2019_v35, %v4888_v20  ;;  %v3549_v27 = vpop.f32.mrb[61].mxu1  ;;  %v1976_v3 = vpop.f32.mrb[62].mxu0 }
 0x243   : > { %v2022_v29 = vpop.f32.mrb[62].mxu1  ;;  %v3544_v40 = vpop.f32.mrb[63].mxu0 }
 0x244   : > { %v2072_v30 = vpack.c.bf16 %v5051_v8, %v5048_v7  ;;  %v3550_v36 = vpop.f32.mrb[63].mxu1 }
 0x246   : > { %3584 = vmatmul.mubr.msk.bf16.gmra.mrb[76].mxu1 %vm2096_vm3, %v2072_v30 }
 0x2a9   : > { %v3557_v44 = vpop.f32.mrb[64].mxu0 }
 0x2aa   : > { %v2188_v19 = vadd.f32 %v3557_v44, %v5056_v37  ;;  %v2179_v16 = vpop.f32.mrb[65].mxu0 }
 0x2ab   : > { %v2180_v20 = vadd.f32 %v5056_v37, %v2179_v16  ;;  %v3558_v42 = vpop.f32.mrb[66].mxu0 }
 0x2ac   : > { %3816 = vtanh.f32 %v2188_v19  ;;  %v2191_v13 = vadd.f32 %v3558_v42, %v5056_v37  ;;  %v2182_v49 = vpop.f32.mrb[67].mxu0 }
 0x2ad   : > { %3818 = vtanh.f32 %v2180_v20  ;;  %v2183_v50 = vadd.f32 %v5056_v37, %v2182_v49 }
 0x2ae   : > { %3820 = vtanh.f32 %v2191_v13 }
 0x2af   : > { %3822 = vtanh.f32 %v2183_v50 }
 0x2b6   : > { %v3817_v48 = vpop.eup %3816 }
 0x2b7   : > { %v3819_v52 = vpop.eup %3818 }
 0x2b8   : > { %v3821_v53 = vpop.eup %3820 }
 0x2b9   : > { %v3823_v24 = vpop.eup %3822  ;;  %v2339_v54 = vpack.c.bf16 %v3821_v53, %v3817_v48  ;;  %v3561_v59 = vpop.f32.mrb[68].mxu0 }
 0x2ba   : > { %v2204_v60 = vadd.f32 %v3561_v59, %v5056_v37  ;;  %v2195_v62 = vpop.f32.mrb[69].mxu0  ;;  %v2338_v4 = vpack.c.bf16 %v3823_v24, %v3819_v52 }
 0x2bb   : > { %v2196_v56 = vadd.f32 %v5056_v37, %v2195_v62  ;;  %v3562_v10 = vpop.f32.mrb[70].mxu0 }
 0x2bc   : > { %3824 = vtanh.f32 %v2204_v60  ;;  %v2207_v11 = vadd.f32 %v3562_v10, %v5056_v37  ;;  %v2198_v32 = vpop.f32.mrb[71].mxu0  ;;  %3595 = vmatprep.mubr.msk.bf16.mxu1 %vm2393_vm4, %v2338_v4 }
 0x2bd   : > { %3826 = vtanh.f32 %v2196_v56  ;;  %v2199_v17 = vadd.f32 %v5056_v37, %v2198_v32  ;;  %3596 = vmatmul.mubr.msk.bf16.vlgmr.msra.gmra.mrb[80].mxu1 %vm2393_vm4, %v2339_v54 }
 0x2be   : > { %3828 = vtanh.f32 %v2207_v11 }
 0x2bf   : > { %3830 = vtanh.f32 %v2199_v17 }
 0x2c6   : > { %v3825_v18 = vpop.eup %3824 }
 0x2c7   : > { %v3827_v35 = vpop.eup %3826 }
 0x2c8   : > { %v3829_v26 = vpop.eup %3828 }
 0x2c9   : > { %v3831_v27 = vpop.eup %3830  ;;  %v3565_v3 = vpop.f32.mrb[72].mxu0  ;;  %v2341_v29 = vpack.c.bf16 %v3829_v26, %v3825_v18 }
 0x2ca   : > { %v2220_v30 = vadd.f32 %v3565_v3, %v5056_v37  ;;  %v2211_v40 = vpop.f32.mrb[73].mxu0  ;;  %v2340_v36 = vpack.c.bf16 %v3831_v27, %v3827_v35 }
 0x2cb   : > { %v2212_v44 = vadd.f32 %v5056_v37, %v2211_v40  ;;  %v3566_v19 = vpop.f32.mrb[74].mxu0 }
 0x2cc   : > { %3832 = vtanh.f32 %v2220_v30  ;;  %v2223_v16 = vadd.f32 %v3566_v19, %v5056_v37  ;;  %v2214_v20 = vpop.f32.mrb[75].mxu0  ;;  %3599 = vmatprep.mubr.msk.bf16.mxu1 %vm2393_vm4, %v2340_v36 }
 0x2cd   : > { %3834 = vtanh.f32 %v2212_v44  ;;  %v2215_v42 = vadd.f32 %v5056_v37, %v2214_v20  ;;  %3600 = vmatmul.mubr.msk.bf16.gmra.mrb[84].mxu1 %vm2393_vm4, %v2341_v29 }
 0x2ce   : > { %3836 = vtanh.f32 %v2223_v16 }
 0x2cf   : > { %3838 = vtanh.f32 %v2215_v42 }
 0x2d6   : > { %v3833_v13 = vpop.eup %3832 }
 0x2d7   : > { %v3835_v49 = vpop.eup %3834 }
 0x2d8   : > { %v3837_v50 = vpop.eup %3836 }
 0x2d9   : > { %v3839_v48 = vpop.eup %3838  ;;  %v3569_v52 = vpop.f32.mrb[76].mxu0  ;;  %v2343_v53 = vpack.c.bf16 %v3837_v50, %v3833_v13 }
 0x2da   : > { %v2236_v24 = vadd.f32 %v3569_v52, %v5056_v37  ;;  %v2227_v54 = vpop.f32.mrb[77].mxu0  ;;  %v2342_v59 = vpack.c.bf16 %v3839_v48, %v3835_v49 }
 0x2db   : > { %v2228_v60 = vadd.f32 %v5056_v37, %v2227_v54  ;;  %v3570_v62 = vpop.f32.mrb[78].mxu0 }
 0x2dc   : > { %3840 = vtanh.f32 %v2236_v24  ;;  %v2239_v4 = vadd.f32 %v3570_v62, %v5056_v37  ;;  %v2230_v56 = vpop.f32.mrb[79].mxu0  ;;  %3603 = vmatprep.mubr.msk.bf16.mxu1 %vm2393_vm4, %v2342_v59 }
 0x2dd   : > { %3842 = vtanh.f32 %v2228_v60  ;;  %v2231_v10 = vadd.f32 %v5056_v37, %v2230_v56  ;;  %3604 = vmatmul.mubr.msk.bf16.gmra.mrb[88].mxu1 %vm2393_vm4, %v2343_v53 }
 0x2de   : > { %3844 = vtanh.f32 %v2239_v4 }
 0x2df   : > { %3846 = vtanh.f32 %v2231_v10 }
 0x2e6   : > { %v3841_v11 = vpop.eup %3840 }
 0x2e7   : > { %v3843_v32 = vpop.eup %3842 }
 0x2e8   : > { %v3845_v17 = vpop.eup %3844 }
 0x2e9   : > { %v3847_v18 = vpop.eup %3846  ;;  %v3573_v35 = vpop.f32.mrb[64].mxu1  ;;  %v2345_v26 = vpack.c.bf16 %v3845_v17, %v3841_v11 }
 0x2ea   : > { %v2252_v27 = vadd.f32 %v3573_v35, %v5056_v37  ;;  %v2243_v3 = vpop.f32.mrb[65].mxu1  ;;  %v2344_v29 = vpack.c.bf16 %v3847_v18, %v3843_v32 }
 0x2eb   : > { %v2244_v30 = vadd.f32 %v5056_v37, %v2243_v3  ;;  %v3574_v40 = vpop.f32.mrb[66].mxu1 }
 0x2ec   : > { %3848 = vtanh.f32 %v2252_v27  ;;  %v2255_v36 = vadd.f32 %v3574_v40, %v5056_v37  ;;  %v2246_v44 = vpop.f32.mrb[67].mxu1  ;;  %3607 = vmatprep.mubr.msk.bf16.mxu1 %vm2393_vm4, %v2344_v29 }
 0x2ed   : > { %3850 = vtanh.f32 %v2244_v30  ;;  %v2247_v19 = vadd.f32 %v5056_v37, %v2246_v44  ;;  %3608 = vmatmul.mubr.msk.bf16.gmra.mrb[92].mxu1 %vm2393_vm4, %v2345_v26 }
 0x2ee   : > { %3852 = vtanh.f32 %v2255_v36 }
 0x2ef   : > { %3854 = vtanh.f32 %v2247_v19 }
 0x2f6   : > { %v3849_v16 = vpop.eup %3848 }
 0x2f7   : > { %v3851_v20 = vpop.eup %3850 }
 0x2f8   : > { %v3853_v42 = vpop.eup %3852 }
 0x2f9   : > { %v3855_v13 = vpop.eup %3854  ;;  %v3577_v49 = vpop.f32.mrb[68].mxu1  ;;  %v2347_v50 = vpack.c.bf16 %v3853_v42, %v3849_v16 }
 0x2fa   : > { %v2268_v48 = vadd.f32 %v3577_v49, %v5056_v37  ;;  %v2259_v52 = vpop.f32.mrb[69].mxu1  ;;  %v2346_v53 = vpack.c.bf16 %v3855_v13, %v3851_v20  ;;  %v3814_v13 = vld [vmem:[#allocation14] sm:$0xff]  }
 0x2fb   : > { %v2260_v24 = vadd.f32 %v5056_v37, %v2259_v52  ;;  %v3578_v54 = vpop.f32.mrb[70].mxu1  ;;  %v3815_v52 = vld [vmem:[#allocation14 + $0x8] sm:$0xff]   ;;  %3627 = vmatprep.subr.bf16.mxu0 %v3814_v13 }
 0x2fc   : > { %3856 = vtanh.f32 %v2268_v48  ;;  %v2271_v59 = vadd.f32 %v3578_v54, %v5056_v37  ;;  %v2262_v60 = vpop.f32.mrb[71].mxu1  ;;  %3611 = vmatprep.mubr.msk.bf16.mxu1 %vm2393_vm4, %v2346_v53  ;;  %3628 = vmatpush3.bf16.msra.mxu0 %v3814_v13 }
 0x2fd   : > { %3858 = vtanh.f32 %v2260_v24  ;;  %v2263_v62 = vadd.f32 %v5056_v37, %v2262_v60  ;;  %3612 = vmatmul.mubr.msk.bf16.gmra.mrb[96].mxu1 %vm2393_vm4, %v2347_v50  ;;  %3629 = vmatprep.subr.bf16.mxu0 %v3815_v52 }
 0x2fe   : > { %3860 = vtanh.f32 %v2271_v59 }
 0x2ff   : > { %3862 = vtanh.f32 %v2263_v62 }
 0x300   : > { %3630 = vmatpush3.bf16.msra.mxu0 %v3815_v52 }
 0x306   : > { %v3857_v4 = vpop.eup %3856 }
 0x307   : > { %v3859_v56 = vpop.eup %3858 }
 0x308   : > { %v3861_v10 = vpop.eup %3860 }
 0x309   : > { %v3863_v11 = vpop.eup %3862  ;;  %v3581_v32 = vpop.f32.mrb[72].mxu1  ;;  %v2349_v17 = vpack.c.bf16 %v3861_v10, %v3857_v4 }
 0x30a   : > { %v2284_v18 = vadd.f32 %v3581_v32, %v5056_v37  ;;  %v2275_v35 = vpop.f32.mrb[73].mxu1  ;;  %v2348_v26 = vpack.c.bf16 %v3863_v11, %v3859_v56 }
 0x30b   : > { %v2276_v27 = vadd.f32 %v5056_v37, %v2275_v35  ;;  %v3582_v3 = vpop.f32.mrb[74].mxu1 }
 0x30c   : > { %3864 = vtanh.f32 %v2284_v18  ;;  %v2287_v29 = vadd.f32 %v3582_v3, %v5056_v37  ;;  %v2278_v30 = vpop.f32.mrb[75].mxu1  ;;  %3615 = vmatprep.mubr.msk.bf16.mxu1 %vm2393_vm4, %v2348_v26 }
 0x30d   : > { %3866 = vtanh.f32 %v2276_v27  ;;  %v2279_v40 = vadd.f32 %v5056_v37, %v2278_v30  ;;  %3616 = vmatmul.mubr.msk.bf16.gmra.mrb[100].mxu1 %vm2393_vm4, %v2349_v17  ;;  %v5106_v17 = vld [vmem:[#allocation12] ss:$0 sm:$0xff] }
 0x30e   : > { %3868 = vtanh.f32 %v2287_v29 }
 0x30f   : > { %3870 = vtanh.f32 %v2279_v40 }
 0x316   : > { %v3865_v36 = vpop.eup %3864 }
 0x317   : > { %v3867_v44 = vpop.eup %3866 }
 0x318   : > { %v3869_v19 = vpop.eup %3868 }
 0x319   : > { %v3871_v16 = vpop.eup %3870  ;;  %v3585_v20 = vpop.f32.mrb[76].mxu1  ;;  %v2351_v42 = vpack.c.bf16 %v3869_v19, %v3865_v36 }
 0x31a   : > { %v2300_v49 = vadd.f32 %v3585_v20, %v5056_v37  ;;  %v2291_v50 = vpop.f32.mrb[77].mxu1  ;;  %v2350_v48 = vpack.c.bf16 %v3871_v16, %v3867_v44 }
 0x31b   : > { %v2292_v53 = vadd.f32 %v5056_v37, %v2291_v50  ;;  %v3586_v24 = vpop.f32.mrb[78].mxu1 }
 0x31c   : > { %3872 = vtanh.f32 %v2300_v49  ;;  %v2303_v54 = vadd.f32 %v3586_v24, %v5056_v37  ;;  %v2294_v59 = vpop.f32.mrb[79].mxu1  ;;  %3619 = vmatprep.mubr.msk.bf16.mxu1 %vm2393_vm4, %v2350_v48 }
 0x31d   : > { %3874 = vtanh.f32 %v2292_v53  ;;  %v2295_v60 = vadd.f32 %v5056_v37, %v2294_v59  ;;  %3620 = vmatmul.mubr.msk.bf16.gmra.mrb[104].mxu1 %vm2393_vm4, %v2351_v42 }
 0x31e   : > { %3876 = vtanh.f32 %v2303_v54 }
 0x31f   : > { %3878 = vtanh.f32 %v2295_v60 }
 0x326   : > { %v3873_v62 = vpop.eup %3872 }
 0x327   : > { %v3875_v4 = vpop.eup %3874 }
 0x328   : > { %v3877_v56 = vpop.eup %3876 }
 0x329   : > { %v3879_v10 = vpop.eup %3878  ;;  %v2353_v11 = vpack.c.bf16 %v3877_v56, %v3873_v62 }
 0x32a   : > { %v2352_v32 = vpack.c.bf16 %v3879_v10, %v3875_v4 }
 0x32c   : > { %3623 = vmatprep.mubr.msk.bf16.mxu1 %vm2393_vm4, %v2352_v32 }
 0x32d   : > { %3624 = vmatmul.mubr.msk.bf16.gmra.mrb[108].mxu1 %vm2393_vm4, %v2353_v11 }
 0x390   : > { %v3597_v18 = vpop.f32.mrb[80].mxu1 }
 0x391   : > { %v2485_v37 = vadd.f32 %v3597_v18, %v5106_v17  ;;  %v2476_v35 = vpop.f32.mrb[81].mxu1 }
 0x392   : > { %v2477_v26 = vadd.f32 %v5106_v17, %v2476_v35  ;;  %v3598_v27 = vpop.f32.mrb[82].mxu1 }
 0x393   : > { %v2488_v3 = vadd.f32 %v3598_v27, %v5106_v17  ;;  %v2479_v29 = vpop.f32.mrb[83].mxu1  ;;  %v2605_v40 = vadd.f32 %v2485_v37, %v4922_v1 }
 0x394   : > { %v2480_v30 = vadd.f32 %v5106_v17, %v2479_v29  ;;  %v2603_v44 = vadd.f32 %v2477_v26, %v4913_v43 }
 0x395   : > { %v2606_v36 = vadd.f32 %v2488_v3, %v4925_v2 }
 0x396   : > { %v2604_v19 = vadd.f32 %v2480_v30, %v4916_v0 }
 0x397   : > { %v2636_v16 = vpack.c.bf16 %v2606_v36, %v2605_v40 }
 0x398   : > { %v2635_v20 = vpack.c.bf16 %v2604_v19, %v2603_v44 }
 0x399   : > { %2652 = vst.msk [vmem:[#allocation2 + $0x8] sm:$0xff] %vm2096_vm3, %v2636_v16 }
 0x39a   : > { %2651 = vst.msk [vmem:[#allocation2] sm:$0xff] %vm2096_vm3, %v2635_v20 }
 0x3a0   : > { %v3601_v42 = vpop.f32.mrb[84].mxu1  ;;  %v2668_v2 = vld [vmem:[#allocation2 + $0x8] sm:$0xff] }
 0x3a1   : > { %v2501_v13 = vadd.f32 %v3601_v42, %v5106_v17  ;;  %v2492_v49 = vpop.f32.mrb[85].mxu1  ;;  %v2667_v50 = vld [vmem:[#allocation2] sm:$0xff] }
 0x3a2   : > { %v2493_v48 = vadd.f32 %v5106_v17, %v2492_v49  ;;  %v3602_v1 = vpop.f32.mrb[86].mxu1  ;;  %3631 = vmatprep.mubr.msk.bf16.mxu0 %vm2096_vm3, %v2667_v50 }
 0x3a3   : > { %v2504_v43 = vadd.f32 %v3602_v1, %v5106_v17  ;;  %v2495_v0 = vpop.f32.mrb[87].mxu1  ;;  %3632 = vmatmul.mubr.msk.bf16.vlgmr.msra.gmra.mrb[80].mxu0 %vm2096_vm3, %v2668_v2  ;;  %v2609_v53 = vadd.f32 %v2501_v13, %v4940_v38 }
 0x3a4   : > { %v2496_v52 = vadd.f32 %v5106_v17, %v2495_v0  ;;  %v2607_v54 = vadd.f32 %v2493_v48, %v4931_v21 }
 0x3a5   : > { %v2610_v24 = vadd.f32 %v2504_v43, %v4943_v15 }
 0x3a6   : > { %v2608_v59 = vadd.f32 %v2496_v52, %v4934_v5 }
 0x3a7   : > { %v2638_v60 = vpack.c.bf16 %v2610_v24, %v2609_v53 }
 0x3a8   : > { %v2637_v62 = vpack.c.bf16 %v2608_v59, %v2607_v54 }
 0x3a9   : > { %2654 = vst.msk [vmem:[#allocation2 + $0x18] sm:$0xff] %vm2096_vm3, %v2638_v60 }
 0x3aa   : > { %2653 = vst.msk [vmem:[#allocation2 + $0x10] sm:$0xff] %vm2096_vm3, %v2637_v62 }
 0x3b0   : > { %v3605_v4 = vpop.f32.mrb[88].mxu1  ;;  %v2670_v15 = vld [vmem:[#allocation2 + $0x18] sm:$0xff] }
 0x3b1   : > { %v2517_v56 = vadd.f32 %v3605_v4, %v5106_v17  ;;  %v2508_v10 = vpop.f32.mrb[89].mxu1  ;;  %v2669_v11 = vld [vmem:[#allocation2 + $0x10] sm:$0xff] }
 0x3b2   : > { %v2509_v32 = vadd.f32 %v5106_v17, %v2508_v10  ;;  %v3606_v38 = vpop.f32.mrb[90].mxu1  ;;  %3635 = vmatprep.mubr.msk.bf16.mxu0 %vm2096_vm3, %v2669_v11 }
 0x3b3   : > { %v2520_v21 = vadd.f32 %v3606_v38, %v5106_v17  ;;  %v2511_v5 = vpop.f32.mrb[91].mxu1  ;;  %3636 = vmatmul.mubr.msk.bf16.gmra.mrb[84].mxu0 %vm2096_vm3, %v2670_v15  ;;  %v2613_v37 = vadd.f32 %v2517_v56, %v4958_v14 }
 0x3b4   : > { %v2512_v18 = vadd.f32 %v5106_v17, %v2511_v5  ;;  %v2611_v26 = vadd.f32 %v2509_v32, %v4949_v58 }
 0x3b5   : > { %v2614_v35 = vadd.f32 %v2520_v21, %v4961_v31 }
 0x3b6   : > { %v2612_v27 = vadd.f32 %v2512_v18, %v4952_v23 }
 0x3b7   : > { %v2640_v3 = vpack.c.bf16 %v2614_v35, %v2613_v37 }
 0x3b8   : > { %v2639_v29 = vpack.c.bf16 %v2612_v27, %v2611_v26 }
 0x3b9   : > { %2656 = vst.msk [vmem:[#allocation2 + $0x28] sm:$0xff] %vm2096_vm3, %v2640_v3 }
 0x3ba   : > { %2655 = vst.msk [vmem:[#allocation2 + $0x20] sm:$0xff] %vm2096_vm3, %v2639_v29 }
 0x3c0   : > { %v3609_v30 = vpop.f32.mrb[92].mxu1  ;;  %v2672_v31 = vld [vmem:[#allocation2 + $0x28] sm:$0xff] }
 0x3c1   : > { %v2533_v40 = vadd.f32 %v3609_v30, %v5106_v17  ;;  %v2524_v36 = vpop.f32.mrb[93].mxu1  ;;  %v2671_v44 = vld [vmem:[#allocation2 + $0x20] sm:$0xff] }
 0x3c2   : > { %v2525_v19 = vadd.f32 %v5106_v17, %v2524_v36  ;;  %v3610_v14 = vpop.f32.mrb[94].mxu1  ;;  %3639 = vmatprep.mubr.msk.bf16.mxu0 %vm2096_vm3, %v2671_v44 }
 0x3c3   : > { %v2536_v58 = vadd.f32 %v3610_v14, %v5106_v17  ;;  %v2527_v23 = vpop.f32.mrb[95].mxu1  ;;  %3640 = vmatmul.mubr.msk.bf16.gmra.mrb[88].mxu0 %vm2096_vm3, %v2672_v31  ;;  %v2617_v20 = vadd.f32 %v2533_v40, %v4976_v51 }
 0x3c4   : > { %v2528_v16 = vadd.f32 %v5106_v17, %v2527_v23  ;;  %v2615_v13 = vadd.f32 %v2525_v19, %v4967_v33 }
 0x3c5   : > { %v2618_v42 = vadd.f32 %v2536_v58, %v4979_v47 }
 0x3c6   : > { %v2616_v49 = vadd.f32 %v2528_v16, %v4970_v39 }
 0x3c7   : > { %v2642_v50 = vpack.c.bf16 %v2618_v42, %v2617_v20 }
 0x3c8   : > { %v2641_v48 = vpack.c.bf16 %v2616_v49, %v2615_v13 }
 0x3c9   : > { %2658 = vst.msk [vmem:[#allocation2 + $0x38] sm:$0xff] %vm2096_vm3, %v2642_v50 }
 0x3ca   : > { %2657 = vst.msk [vmem:[#allocation2 + $0x30] sm:$0xff] %vm2096_vm3, %v2641_v48 }
 0x3d0   : > { %v3613_v1 = vpop.f32.mrb[96].mxu1  ;;  %v2674_v47 = vld [vmem:[#allocation2 + $0x38] sm:$0xff] }
 0x3d1   : > { %v2549_v2 = vadd.f32 %v3613_v1, %v5106_v17  ;;  %v2540_v43 = vpop.f32.mrb[97].mxu1  ;;  %v2673_v0 = vld [vmem:[#allocation2 + $0x30] sm:$0xff] }
 0x3d2   : > { %v2541_v52 = vadd.f32 %v5106_v17, %v2540_v43  ;;  %v3614_v51 = vpop.f32.mrb[98].mxu1  ;;  %3643 = vmatprep.mubr.msk.bf16.mxu0 %vm2096_vm3, %v2673_v0 }
 0x3d3   : > { %v2552_v33 = vadd.f32 %v3614_v51, %v5106_v17  ;;  %v2543_v39 = vpop.f32.mrb[99].mxu1  ;;  %3644 = vmatmul.mubr.msk.bf16.gmra.mrb[92].mxu0 %vm2096_vm3, %v2674_v47  ;;  %v2621_v24 = vadd.f32 %v2549_v2, %v4994_v28 }
 0x3d4   : > { %v2544_v53 = vadd.f32 %v5106_v17, %v2543_v39  ;;  %v2619_v59 = vadd.f32 %v2541_v52, %v4985_v9 }
 0x3d5   : > { %v2622_v54 = vadd.f32 %v2552_v33, %v4997_v63 }
 0x3d6   : > { %v2620_v60 = vadd.f32 %v2544_v53, %v4988_v55 }
 0x3d7   : > { %v2644_v62 = vpack.c.bf16 %v2622_v54, %v2621_v24 }
 0x3d8   : > { %v2643_v4 = vpack.c.bf16 %v2620_v60, %v2619_v59 }
 0x3d9   : > { %2660 = vst.msk [vmem:[#allocation2 + $0x48] sm:$0xff] %vm2096_vm3, %v2644_v62 }
 0x3da   : > { %2659 = vst.msk [vmem:[#allocation2 + $0x40] sm:$0xff] %vm2096_vm3, %v2643_v4 }
 0x3e0   : > { %v3617_v56 = vpop.f32.mrb[100].mxu1  ;;  %v2676_v63 = vld [vmem:[#allocation2 + $0x48] sm:$0xff] }
 0x3e1   : > { %v2565_v10 = vadd.f32 %v3617_v56, %v5106_v17  ;;  %v2556_v11 = vpop.f32.mrb[101].mxu1  ;;  %v2675_v32 = vld [vmem:[#allocation2 + $0x40] sm:$0xff] }
 0x3e2   : > { %v2557_v38 = vadd.f32 %v5106_v17, %v2556_v11  ;;  %v3618_v28 = vpop.f32.mrb[102].mxu1  ;;  %3647 = vmatprep.mubr.msk.bf16.mxu0 %vm2096_vm3, %v2675_v32 }
 0x3e3   : > { %v2568_v9 = vadd.f32 %v3618_v28, %v5106_v17  ;;  %v2559_v55 = vpop.f32.mrb[103].mxu1  ;;  %3648 = vmatmul.mubr.msk.bf16.gmra.mrb[96].mxu0 %vm2096_vm3, %v2676_v63  ;;  %v2625_v21 = vadd.f32 %v2565_v10, %v5012_v61 }
 0x3e4   : > { %v2560_v15 = vadd.f32 %v5106_v17, %v2559_v55  ;;  %v2623_v18 = vadd.f32 %v2557_v38, %v5003_v46 }
 0x3e5   : > { %v2626_v5 = vadd.f32 %v2568_v9, %v5015_v22 }
 0x3e6   : > { %v2624_v37 = vadd.f32 %v2560_v15, %v5006_v12 }
 0x3e7   : > { %v2646_v35 = vpack.c.bf16 %v2626_v5, %v2625_v21 }
 0x3e8   : > { %v2645_v26 = vpack.c.bf16 %v2624_v37, %v2623_v18 }
 0x3e9   : > { %2662 = vst.msk [vmem:[#allocation2 + $0x58] sm:$0xff] %vm2096_vm3, %v2646_v35 }
 0x3ea   : > { %2661 = vst.msk [vmem:[#allocation2 + $0x50] sm:$0xff] %vm2096_vm3, %v2645_v26 }
 0x3f0   : > { %v3621_v27 = vpop.f32.mrb[104].mxu1  ;;  %v2678_v22 = vld [vmem:[#allocation2 + $0x58] sm:$0xff] }
 0x3f1   : > { %v2581_v3 = vadd.f32 %v3621_v27, %v5106_v17  ;;  %v2572_v29 = vpop.f32.mrb[105].mxu1  ;;  %v2677_v30 = vld [vmem:[#allocation2 + $0x50] sm:$0xff] }
 0x3f2   : > { %v2573_v40 = vadd.f32 %v5106_v17, %v2572_v29  ;;  %v3622_v61 = vpop.f32.mrb[106].mxu1  ;;  %3651 = vmatprep.mubr.msk.bf16.mxu0 %vm2096_vm3, %v2677_v30 }
 0x3f3   : > { %v2584_v46 = vadd.f32 %v3622_v61, %v5106_v17  ;;  %v2575_v12 = vpop.f32.mrb[107].mxu1  ;;  %3652 = vmatmul.mubr.msk.bf16.gmra.mrb[100].mxu0 %vm2096_vm3, %v2678_v22  ;;  %v2629_v44 = vadd.f32 %v2581_v3, %v5030_v45 }
 0x3f4   : > { %v2576_v36 = vadd.f32 %v5106_v17, %v2575_v12  ;;  %v2627_v14 = vadd.f32 %v2573_v40, %v5021_v6 }
 0x3f5   : > { %v2630_v19 = vadd.f32 %v2584_v46, %v5033_v41 }
 0x3f6   : > { %v2628_v31 = vadd.f32 %v2576_v36, %v5024_v34 }
 0x3f7   : > { %v2648_v58 = vpack.c.bf16 %v2630_v19, %v2629_v44 }
 0x3f8   : > { %v2647_v23 = vpack.c.bf16 %v2628_v31, %v2627_v14 }
 0x3f9   : > { %2664 = vst.msk [vmem:[#allocation2 + $0x68] sm:$0xff] %vm2096_vm3, %v2648_v58 }
 0x3fa   : > { %2663 = vst.msk [vmem:[#allocation2 + $0x60] sm:$0xff] %vm2096_vm3, %v2647_v23 }
 0x400   : > { %v3625_v16 = vpop.f32.mrb[108].mxu1  ;;  %v2680_v41 = vld [vmem:[#allocation2 + $0x68] sm:$0xff] }
 0x401   : > { %v2597_v20 = vadd.f32 %v3625_v16, %v5106_v17  ;;  %v2588_v42 = vpop.f32.mrb[109].mxu1  ;;  %v2679_v13 = vld [vmem:[#allocation2 + $0x60] sm:$0xff] }
 0x402   : > { %v2589_v49 = vadd.f32 %v5106_v17, %v2588_v42  ;;  %v3626_v45 = vpop.f32.mrb[110].mxu1  ;;  %3655 = vmatprep.mubr.msk.bf16.mxu0 %vm2096_vm3, %v2679_v13 }
 0x403   : > { %v2600_v6 = vadd.f32 %v3626_v45, %v5106_v17  ;;  %v2591_v34 = vpop.f32.mrb[111].mxu1  ;;  %3656 = vmatmul.mubr.msk.bf16.gmra.mrb[104].mxu0 %vm2096_vm3, %v2680_v41  ;;  %v2633_v48 = vadd.f32 %v2597_v20, %v5048_v7  ;;  %v5204_v7 = vld [vmem:[#allocation15] ss:$0 sm:$0xff] }
 0x404   : > { %v2592_v50 = vadd.f32 %v5106_v17, %v2591_v34  ;;  %v2631_v2 = vadd.f32 %v2589_v49, %v5039_v57 }
 0x405   : > { %v2634_v1 = vadd.f32 %v2600_v6, %v5051_v8 }
 0x406   : > { %v2632_v43 = vadd.f32 %v2592_v50, %v5042_v25 }
 0x407   : > { %v2650_v0 = vpack.c.bf16 %v2634_v1, %v2633_v48 }
 0x408   : > { %v2649_v52 = vpack.c.bf16 %v2632_v43, %v2631_v2 }
 0x409   : > { %2666 = vst.msk [vmem:[#allocation2 + $0x78] sm:$0xff] %vm2096_vm3, %v2650_v0 }
 0x40a   : > { %2665 = vst.msk [vmem:[#allocation2 + $0x70] sm:$0xff] %vm2096_vm3, %v2649_v52 }
 0x410   : > { %v2682_v47 = vld [vmem:[#allocation2 + $0x78] sm:$0xff] }
 0x411   : > { %v2681_v51 = vld [vmem:[#allocation2 + $0x70] sm:$0xff] }
 0x412   : > { %3659 = vmatprep.mubr.msk.bf16.mxu0 %vm2096_vm3, %v2681_v51 }
 0x413   : > { %3660 = vmatmul.mubr.msk.bf16.gmra.mrb[108].mxu0 %vm2096_vm3, %v2682_v47 }
 0x476   : > { %v3633_v8 = vpop.f32.mrb[80].mxu0 }
 0x477   : > { %v2798_v57 = vadd.f32 %v3633_v8, %v5204_v7  ;;  %v2789_v17 = vpop.f32.mrb[81].mxu0 }
 0x478   : > { %v2790_v25 = vadd.f32 %v5204_v7, %v2789_v17  ;;  %v3634_v33 = vpop.f32.mrb[82].mxu0 }
 0x479   : > { %2918 = vst [vmem:[%s5210_s12 + $0x10] sm:$0xff] %v2798_v57  ;;  %v2801_v39 = vadd.f32 %v3634_v33, %v5204_v7  ;;  %v2792_v53 = vpop.f32.mrb[83].mxu0 }
 0x47a   : > { %2916 = vst [vmem:[%s5210_s12] sm:$0xff] %v2790_v25  ;;  %v2793_v24 = vadd.f32 %v5204_v7, %v2792_v53 }
 0x47b   : > { %2919 = vst [vmem:[%s5210_s12 + $0x18] sm:$0xff] %v2801_v39 }
 0x47c   : > { %2917 = vst [vmem:[%s5210_s12 + $0x8] sm:$0xff] %v2793_v24 }
 0x486   : > { %v3637_v54 = vpop.f32.mrb[84].mxu0 }
 0x487   : > { %v2814_v59 = vadd.f32 %v3637_v54, %v5204_v7  ;;  %v2805_v60 = vpop.f32.mrb[85].mxu0 }
 0x488   : > { %v2806_v62 = vadd.f32 %v5204_v7, %v2805_v60  ;;  %v3638_v4 = vpop.f32.mrb[86].mxu0 }
 0x489   : > { %2922 = vst [vmem:[%s5210_s12 + $0x30] sm:$0xff] %v2814_v59  ;;  %v2817_v56 = vadd.f32 %v3638_v4, %v5204_v7  ;;  %v2808_v10 = vpop.f32.mrb[87].mxu0 }
 0x48a   : > { %2920 = vst [vmem:[%s5210_s12 + $0x20] sm:$0xff] %v2806_v62  ;;  %v2809_v11 = vadd.f32 %v5204_v7, %v2808_v10 }
 0x48b   : > { %2923 = vst [vmem:[%s5210_s12 + $0x38] sm:$0xff] %v2817_v56 }
 0x48c   : > { %2921 = vst [vmem:[%s5210_s12 + $0x28] sm:$0xff] %v2809_v11 }
 0x496   : > { %v3641_v32 = vpop.f32.mrb[88].mxu0 }
 0x497   : > { %v2830_v38 = vadd.f32 %v3641_v32, %v5204_v7  ;;  %v2821_v28 = vpop.f32.mrb[89].mxu0 }
 0x498   : > { %v2822_v63 = vadd.f32 %v5204_v7, %v2821_v28  ;;  %v3642_v9 = vpop.f32.mrb[90].mxu0 }
 0x499   : > { %2926 = vst [vmem:[%s5210_s12 + $0x50] sm:$0xff] %v2830_v38  ;;  %v2833_v55 = vadd.f32 %v3642_v9, %v5204_v7  ;;  %v2824_v15 = vpop.f32.mrb[91].mxu0 }
 0x49a   : > { %2924 = vst [vmem:[%s5210_s12 + $0x40] sm:$0xff] %v2822_v63  ;;  %v2825_v21 = vadd.f32 %v5204_v7, %v2824_v15 }
 0x49b   : > { %2927 = vst [vmem:[%s5210_s12 + $0x58] sm:$0xff] %v2833_v55 }
 0x49c   : > { %2925 = vst [vmem:[%s5210_s12 + $0x48] sm:$0xff] %v2825_v21 }
 0x4a6   : > { %v3645_v5 = vpop.f32.mrb[92].mxu0 }
 0x4a7   : > { %v2846_v18 = vadd.f32 %v3645_v5, %v5204_v7  ;;  %v2837_v37 = vpop.f32.mrb[93].mxu0 }
 0x4a8   : > { %v2838_v35 = vadd.f32 %v5204_v7, %v2837_v37  ;;  %v3646_v26 = vpop.f32.mrb[94].mxu0 }
 0x4a9   : > { %2930 = vst [vmem:[%s5210_s12 + $0x70] sm:$0xff] %v2846_v18  ;;  %v2849_v27 = vadd.f32 %v3646_v26, %v5204_v7  ;;  %v2840_v3 = vpop.f32.mrb[95].mxu0 }
 0x4aa   : > { %2928 = vst [vmem:[%s5210_s12 + $0x60] sm:$0xff] %v2838_v35  ;;  %v2841_v29 = vadd.f32 %v5204_v7, %v2840_v3 }
 0x4ab   : > { %2931 = vst [vmem:[%s5210_s12 + $0x78] sm:$0xff] %v2849_v27 }
 0x4ac   : > { %2929 = vst [vmem:[%s5210_s12 + $0x68] sm:$0xff] %v2841_v29 }
 0x4b6   : > { %v3649_v30 = vpop.f32.mrb[96].mxu0 }
 0x4b7   : > { %v2862_v40 = vadd.f32 %v3649_v30, %v5204_v7  ;;  %v2853_v61 = vpop.f32.mrb[97].mxu0 }
 0x4b8   : > { %v2854_v22 = vadd.f32 %v5204_v7, %v2853_v61  ;;  %v3650_v46 = vpop.f32.mrb[98].mxu0 }
 0x4b9   : > { %2934 = vst [vmem:[%s5210_s12 + $0x90] sm:$0xff] %v2862_v40  ;;  %v2865_v12 = vadd.f32 %v3650_v46, %v5204_v7  ;;  %v2856_v36 = vpop.f32.mrb[99].mxu0 }
 0x4ba   : > { %2932 = vst [vmem:[%s5210_s12 + $0x80] sm:$0xff] %v2854_v22  ;;  %v2857_v44 = vadd.f32 %v5204_v7, %v2856_v36 }
 0x4bb   : > { %2935 = vst [vmem:[%s5210_s12 + $0x98] sm:$0xff] %v2865_v12 }
 0x4bc   : > { %2933 = vst [vmem:[%s5210_s12 + $0x88] sm:$0xff] %v2857_v44 }
 0x4c6   : > { %v3653_v19 = vpop.f32.mrb[100].mxu0 }
 0x4c7   : > { %v2878_v14 = vadd.f32 %v3653_v19, %v5204_v7  ;;  %v2869_v31 = vpop.f32.mrb[101].mxu0 }
 0x4c8   : > { %v2870_v58 = vadd.f32 %v5204_v7, %v2869_v31  ;;  %v3654_v23 = vpop.f32.mrb[102].mxu0 }
 0x4c9   : > { %2938 = vst [vmem:[%s5210_s12 + $0xb0] sm:$0xff] %v2878_v14  ;;  %v2881_v16 = vadd.f32 %v3654_v23, %v5204_v7  ;;  %v2872_v20 = vpop.f32.mrb[103].mxu0 }
 0x4ca   : > { %2936 = vst [vmem:[%s5210_s12 + $0xa0] sm:$0xff] %v2870_v58  ;;  %v2873_v42 = vadd.f32 %v5204_v7, %v2872_v20 }
 0x4cb   : > { %2939 = vst [vmem:[%s5210_s12 + $0xb8] sm:$0xff] %v2881_v16 }
 0x4cc   : > { %2937 = vst [vmem:[%s5210_s12 + $0xa8] sm:$0xff] %v2873_v42 }
 0x4d6   : > { %v3657_v13 = vpop.f32.mrb[104].mxu0 }
 0x4d7   : > { %v2894_v49 = vadd.f32 %v3657_v13, %v5204_v7  ;;  %v2885_v45 = vpop.f32.mrb[105].mxu0 }
 0x4d8   : > { %v2886_v41 = vadd.f32 %v5204_v7, %v2885_v45  ;;  %v3658_v6 = vpop.f32.mrb[106].mxu0 }
 0x4d9   : > { %2942 = vst [vmem:[%s5210_s12 + $0xd0] sm:$0xff] %v2894_v49  ;;  %v2897_v34 = vadd.f32 %v3658_v6, %v5204_v7  ;;  %v2888_v50 = vpop.f32.mrb[107].mxu0 }
 0x4da   : > { %2940 = vst [vmem:[%s5210_s12 + $0xc0] sm:$0xff] %v2886_v41  ;;  %v2889_v48 = vadd.f32 %v5204_v7, %v2888_v50 }
 0x4db   : > { %2943 = vst [vmem:[%s5210_s12 + $0xd8] sm:$0xff] %v2897_v34 }
 0x4dc   : > { %2941 = vst [vmem:[%s5210_s12 + $0xc8] sm:$0xff] %v2889_v48 }
 0x4e6   : > { %v3661_v1 = vpop.f32.mrb[108].mxu0 }
 0x4e7   : > { %v2910_v2 = vadd.f32 %v3661_v1, %v5204_v7  ;;  %v2901_v43 = vpop.f32.mrb[109].mxu0 }
 0x4e8   : > { %v2902_v0 = vadd.f32 %v5204_v7, %v2901_v43  ;;  %v3662_v52 = vpop.f32.mrb[110].mxu0 }
 0x4e9   : > { %2946 = vst [vmem:[%s5210_s12 + $0xf0] sm:$0xff] %v2910_v2  ;;  %v2913_v51 = vadd.f32 %v3662_v52, %v5204_v7  ;;  %v2904_v47 = vpop.f32.mrb[111].mxu0 }
 0x4ea   : > { %2944 = vst [vmem:[%s5210_s12 + $0xe0] sm:$0xff] %v2902_v0  ;;  %v2905_v8 = vadd.f32 %v5204_v7, %v2904_v47 }
 0x4eb   : > { %2947 = vst [vmem:[%s5210_s12 + $0xf8] sm:$0xff] %v2913_v51 }
 0x4ec   : > { %2945 = vst [vmem:[%s5210_s12 + $0xe8] sm:$0xff] %v2905_v8 }
 0x4ed   : > { %4119 = shalt.err (!%p4116_p8)
}
 0x4ee   : > { %s4120_s25 = scalar_lea.hbm %s5275_s8, 4096  ;;  %s4124_s19 = scalar_lea.hbm %s5366_s21, 8192 }
 0x4ef   : > { %p4121_p3 = scmp.ne.s32.totalorder %s5275_s8, %s4120_s25  ;;  %p4125_p0 = scmp.lt.u32.totalorder %s5275_s8, %s5366_s21 }
 0x4f0   : > { %p4126_p1 = scmp.lt.u32.totalorder %s4124_s19, %s4120_s25  ;;  %p4128_p6 = scmp.lt.u32.totalorder %s4120_s25, %s5275_s8 }
 0x4f1   : > { %p4122_p12 = pnand %p4121_p3, %p5367_p5 }
 0x4f2   : > { %p4127_p7 = por %p4126_p1, %p4125_p0 }
 0x4f3   : > { %p4123_p13 = pneg %p4122_p12 }
 0x4f4   : > { %p4129_p10 = por %p4128_p6, %p4127_p7 }
 0x4f6   : > { %p4130_p11 = pnand %p4129_p10, %p4123_p13 }
 0x4f8   : > { %4133 = shalt.err (!%p4130_p11)
}
 0x4f9   : > { %s4221_s23 = smov 128   ;;  %s4222_s1 = smov 8  }
 0x4fa   : > { %3697 = dma.vmem_to_hbm [thread:$0]  (%p5367_p5), %s5277_s30, 4096, %s5275_s8, %s2949_s20, %s4221_s23, %s4221_s23, %s4222_s1  }
 0x4fb PF: > { %s2978_s22 = sand.u32 1, %s4184_s27   ;;  %p5368_p2 = scmp.ne.s32.totalorder %s5361_s11, 0 }
 0x4fc   : > { %p5369_p4 = scmp.ge.s32.totalorder %s4204_s10, 2  ;;  %s2979_s18 = scalar_lea.sflag [#allocation5], %s2978_s22 }
 0x4fe   : > { %p3726_p9 = pnand %p5369_p4, %p5368_p2 }
 0x500   : > { %4179 = dma.done.wait (!%p3726_p9), %s2979_s18, 4096  }
 0x501   : > { %4181 = vsyncadd (!%p3726_p9), %s2979_s18, 4294963200  ;;  %s28_s10 = sadd.s32 1, %s4204_s10   ;;  %s5370_s27 = smov %s4188_s28 }
 0x502   : > { %p25_p8 = scmp.ge.s32.totalorder %s28_s10, 4   ;;  %s5371_s28 = smov %s4192_s29 }
 0x503   : > { %s5372_s29 = smov %s4512_s15  ;;  %s5373_s30 = smov %s4200_s9 }
 0x504   : > { %s5374_s9 = smov %s5376_s14  ;;  %27 = sbr.rel (!%p25_p8) target bundleno = 13 (0xd), region = 131 }
 0x50b   :  { %2984 = vsyncpa [#allocation4], 1 }
 0x50c   :  { %2986 = vsyncpa [#allocation4 + $0x1], 1 }
 0x50d   :  { %2987 = vsyncpa [#allocation7], 1 }
 0x50e   :  { %2988 = vsyncpa [#allocation10], 1 }
 0x50f   :  { %2989 = vsyncpa [#allocation13], 1 }
 0x510   :  { %2990 = vsyncpa [#allocation16], 1 }
 0x511   :  { %2991 = vsyncpa [#allocation5], 1 }
 0x512   :  { %2993 = vsyncpa [#allocation5 + $0x1], 1 }

</bundles_post_ra>
